<compile_context>
chip_gen: v7x
topology: tpu7x:2x2x1
jax: 0.10.0
libtpu: 0.0.40
codegen_flags: <defaults>
</compile_context>

<pallas_src>
import jax
import jax.numpy as jnp
from jax import lax
from jax.experimental import pallas as pl
from jax.experimental.pallas import tpu as pltpu

# ----------------------------- small config -----------------------------------
VOCAB = 64
HIDDEN = 64
INTER = 128
N_LAYERS = 2
N_HEADS = 4
N_KV = 2
HEAD_DIM = HIDDEN // N_HEADS          # 16
N_EXPERTS = 4
TOP_K = 2                             # PhiMoE only supports top-2
EPS = 1e-5                            # nn.LayerNorm eps (config.rms_norm_eps)
ROPE_THETA = 1e6                      # PhiMoEConfig default rope_theta
SEQ = 8

Q_SIZE = N_HEADS * HEAD_DIM           # 64
KV_SIZE = N_KV * HEAD_DIM             # 32
QKV_SIZE = Q_SIZE + 2 * KV_SIZE       # 128
ROPE_HALF = HEAD_DIM // 2             # 8
SCALE = HEAD_DIM ** -0.5
GROUP = N_HEADS // N_KV
EI = N_EXPERTS * INTER                # 512
NEG = -1e30                           # finite "masked" value (no -inf/NaN risk)


# ----------------------------- in-kernel helpers --------------------------------
def _layer_norm(x, w, b):
    """nn.LayerNorm with elementwise affine; x:(T,H), w/b:(1,H)."""
    mean = jnp.mean(x, axis=-1, keepdims=True)
    var = jnp.mean(jnp.square(x - mean), axis=-1, keepdims=True)
    return (x - mean) * lax.rsqrt(var + EPS) * w + b


def _sparsemixer_dense(scores, jitter_eps=0.01):
    """PhiMoE sparsemixer (top-2, no renorm) as dense (T,E) weights.

    Matches vLLM: for both passes the jitter threshold uses the ORIGINAL
    scores ((max - scores)/clamp(|scores|, min=max)), and the top-2 mask is
    applied to masked_scores (top-1 lane already at -inf).  Argmax-free
    (iota + reductions) so it lowers cleanly in-kernel.
    """
    T, E = scores.shape
    lane = lax.broadcasted_iota(jnp.int32, (T, E), 1)
    neg_inf = jnp.float32(-jnp.inf)

    def masked_softmax_pick(masked_base, max_val, onehot):
        factor = jnp.maximum(jnp.abs(scores), max_val)
        mask = (max_val - scores) / factor > 2 * jitter_eps
        g = jnp.where(mask, neg_inf, masked_base)
        m = jnp.max(g, axis=-1, keepdims=True)
        p = jnp.exp(g - m)
        sm = p / jnp.sum(p, axis=-1, keepdims=True)
        return jnp.sum(jnp.where(onehot, sm, 0.0), axis=-1, keepdims=True)

    # top-1 (first-occurrence argmax via iota-min)
    max1 = jnp.max(scores, axis=-1, keepdims=True)
    ind1 = jnp.min(jnp.where(scores >= max1, lane, E), axis=-1, keepdims=True)
    oh1 = lane == ind1
    mult1 = masked_softmax_pick(scores, max1, oh1)

    # top-2 (mask out top-1, repeat)
    masked_scores = jnp.where(oh1, neg_inf, scores)
    max2 = jnp.max(masked_scores, axis=-1, keepdims=True)
    ind2 = jnp.min(jnp.where(masked_scores >= max2, lane, E), axis=-1, keepdims=True)
    oh2 = lane == ind2
    mult2 = masked_softmax_pick(masked_scores, max2, oh2)

    return jnp.where(oh1, mult1, 0.0) + jnp.where(oh2, mult2, 0.0)


# ----------------------------- fused layer kernel -------------------------------
def _phimoe_layers_kernel(h0_ref, cos_ref, sin_ref, mask_ref, expand_ref,
                          ln1w_ref, ln1b_ref, qkv2w_ref, qkv2b_ref,
                          ow_ref, ob_ref, ln2w_ref, ln2b_ref,
                          gw_ref, w13_ref, w2_ref, nw_ref, nb_ref,
                          out_ref):
    layer = pl.program_id(0)

    @pl.when(layer == 0)
    def _init():
        out_ref[...] = h0_ref[...]

    hidden = out_ref[...]                                  # (T, H) f32 carry
    T = hidden.shape[0]
    mask = mask_ref[...]                                   # (T, T) additive causal

    # ------------------------- self-attention block -----------------------------
    x = _layer_norm(hidden, ln1w_ref[0], ln1b_ref[0])
    xb = x.astype(jnp.bfloat16)
    # One wide matmul gives [qkv | qkv@P] (P = per-head rotate-half, folded
    # into the weight in the wrapper); slice at the 128-lane boundary.
    qkv2 = jnp.dot(xb, qkv2w_ref[0],
                   preferred_element_type=jnp.float32) + qkv2b_ref[0]    # (T, 256)
    qkv = qkv2[:, :QKV_SIZE]
    qkv_perm = qkv2[:, QKV_SIZE:]
    # Full-width neox RoPE (q and k regions; v region has cos=1, sin=0).
    qkv_r = qkv * cos_ref[...] + qkv_perm * sin_ref[...]                 # (T, 128)

    q = qkv_r[:, :Q_SIZE]
    k = qkv_r[:, Q_SIZE:Q_SIZE + KV_SIZE]
    v = qkv_r[:, Q_SIZE + KV_SIZE:]
    k_heads = [k[:, g * HEAD_DIM:(g + 1) * HEAD_DIM] for g in range(N_KV)]
    v_heads = [v[:, g * HEAD_DIM:(g + 1) * HEAD_DIM] for g in range(N_KV)]

    # Per-head attention with o_proj folded in (no head concat).
    attn_o = jnp.zeros((T, HIDDEN), jnp.float32)
    for h in range(N_HEADS):
        qh = q[:, h * HEAD_DIM:(h + 1) * HEAD_DIM]                       # (T, D)
        kh = k_heads[h // GROUP]
        vh = v_heads[h // GROUP]
        s = lax.dot_general(qh, kh, (((1,), (1,)), ((), ())),
                            preferred_element_type=jnp.float32) * SCALE + mask
        s = s - jnp.max(s, axis=-1, keepdims=True)
        p = jnp.exp(s)
        p = p / jnp.sum(p, axis=-1, keepdims=True)
        head = jnp.dot(p, vh, preferred_element_type=jnp.float32)        # (T, D)
        attn_o = attn_o + jnp.dot(
            head.astype(jnp.bfloat16),
            ow_ref[0, h * HEAD_DIM:(h + 1) * HEAD_DIM, :],               # (D, H) bf16
            preferred_element_type=jnp.float32)
    attn_o = attn_o + ob_ref[0]
    h1 = attn_o + hidden                                                 # residual add

    # ------------------------- block-sparse MoE ---------------------------------
    x2 = _layer_norm(h1, ln2w_ref[0], ln2b_ref[0])
    x2b = x2.astype(jnp.bfloat16)
    router_logits = jnp.dot(x2b, gw_ref[0],
                            preferred_element_type=jnp.float32)          # (T, E)
    dense_w = _sparsemixer_dense(router_logits)                          # (T, E) f32

    # All experts' gate|up in ONE matmul; 512-lane-aligned slices.
    gu = jnp.dot(x2b, w13_ref[0], preferred_element_type=jnp.float32)    # (T, 2*E*I)
    g_all = gu[:, :EI]
    u_all = gu[:, EI:]
    act = g_all * jax.nn.sigmoid(g_all) * u_all                          # silu gate
    # Expand per-expert routing weights to per-lane scale with one tiny matmul
    # against a constant (E, E*I) block-indicator (avoids relayout/repeat).
    scale = jnp.dot(dense_w, expand_ref[...],
                    preferred_element_type=jnp.float32)                  # (T, E*I)
    # All experts' down-proj + weighted sum in ONE K=E*I matmul.
    moe = jnp.dot((act * scale).astype(jnp.bfloat16), w2_ref[0],
                  preferred_element_type=jnp.float32)                    # (T, H)

    h2 = moe + h1                                                        # residual add
    out_ref[...] = h2                                                    # carry

    @pl.when(layer == pl.num_programs(0) - 1)
    def _finalize():
        out_ref[...] = _layer_norm(h2, nw_ref[...], nb_ref[...])         # final norm


# ----------------------------- model forward ------------------------------------
def phimoe_forward(params, input_ids, positions):
    hidden0 = params["embed"][input_ids]                                 # (T, H) f32
    T = hidden0.shape[0]

    # --- rope tables, tiled to the full qkv width (q heads | k heads | v=identity)
    inv_freq = 1.0 / (ROPE_THETA ** (jnp.arange(ROPE_HALF, dtype=jnp.float32)
                                     / ROPE_HALF))
    freqs = positions.astype(jnp.float32)[:, None] * inv_freq[None, :]   # (T, half)
    cos = jnp.cos(freqs)
    sin = jnp.sin(freqs)
    cos_head = jnp.concatenate([cos, cos], axis=-1)                      # (T, D)
    sin_head = jnp.concatenate([-sin, sin], axis=-1)                     # (T, D)
    cos_t = jnp.concatenate([jnp.tile(cos_head, (1, N_HEADS)),
                             jnp.tile(cos_head, (1, N_KV)),
                             jnp.ones((T, KV_SIZE), jnp.float32)], axis=-1)
    sin_t = jnp.concatenate([jnp.tile(sin_head, (1, N_HEADS)),
                             jnp.tile(sin_head, (1, N_KV)),
                             jnp.zeros((T, KV_SIZE), jnp.float32)], axis=-1)

    # --- per-head rotate-half permutation folded into the QKV weight
    j = jnp.arange(QKV_SIZE)
    src = (j // HEAD_DIM) * HEAD_DIM + (j % HEAD_DIM + ROPE_HALF) % HEAD_DIM
    perm = (jnp.arange(QKV_SIZE)[:, None] == src[None, :]).astype(jnp.float32)
    perm = perm * (j[None, :] < Q_SIZE + KV_SIZE)                        # zero v cols
    qkv_w_f32 = params["qkv_w"].astype(jnp.float32)
    qkv2_w = jnp.concatenate(
        [params["qkv_w"], (qkv_w_f32 @ perm).astype(jnp.bfloat16)], axis=-1)  # (L,H,256)
    qkv2_b = jnp.concatenate([params["qkv_b"], params["qkv_b"] @ perm], axis=-1)

    # --- constants hoisted out of the per-layer body
    pos_i = jnp.arange(T)
    causal_mask = jnp.where(pos_i[:, None] >= pos_i[None, :], 0.0, NEG
                            ).astype(jnp.float32)                        # (T, T)
    expand = (jnp.arange(N_EXPERTS)[:, None] ==
              (jnp.arange(EI)[None, :] // INTER)).astype(jnp.float32)    # (E, E*I)

    const2 = lambda l: (0, 0)
    per_layer = lambda l: (l, 0, 0)

    grid_spec = pltpu.PrefetchScalarGridSpec(
        num_scalar_prefetch=0,
        grid=(N_LAYERS,),
        in_specs=[
            pl.BlockSpec((T, HIDDEN), const2),                  # hidden0
            pl.BlockSpec((T, QKV_SIZE), const2),                # cos_t
            pl.BlockSpec((T, QKV_SIZE), const2),                # sin_t
            pl.BlockSpec((T, T), const2),                       # causal mask
            pl.BlockSpec((N_EXPERTS, EI), const2),              # routing expand
            pl.BlockSpec((1, 1, HIDDEN), per_layer),            # ln1_w
            pl.BlockSpec((1, 1, HIDDEN), per_layer),            # ln1_b
            pl.BlockSpec((1, HIDDEN, 2 * QKV_SIZE), per_layer), # qkv2_w (rope folded)
            pl.BlockSpec((1, 1, 2 * QKV_SIZE), per_layer),      # qkv2_b
            pl.BlockSpec((1, Q_SIZE, HIDDEN), per_layer),       # o_w
            pl.BlockSpec((1, 1, HIDDEN), per_layer),            # o_b
            pl.BlockSpec((1, 1, HIDDEN), per_layer),            # ln2_w
            pl.BlockSpec((1, 1, HIDDEN), per_layer),            # ln2_b
            pl.BlockSpec((1, HIDDEN, N_EXPERTS), per_layer),    # gate_w
            pl.BlockSpec((1, HIDDEN, 2 * EI), per_layer),       # w13 stacked
            pl.BlockSpec((1, EI, HIDDEN), per_layer),           # w2 stacked
            pl.BlockSpec((1, HIDDEN), const2),                  # final norm_w
            pl.BlockSpec((1, HIDDEN), const2),                  # final norm_b
        ],
        out_specs=pl.BlockSpec((T, HIDDEN), const2),            # resident carry
    )

    return pl.pallas_call(
        _phimoe_layers_kernel,
        out_shape=jax.ShapeDtypeStruct((T, HIDDEN), jnp.float32),
        grid_spec=grid_spec,
        compiler_params=pltpu.CompilerParams(
            dimension_semantics=("arbitrary",)),   # layers are a sequential carry
    )(hidden0, cos_t, sin_t, causal_mask, expand,
      params["ln1_w"], params["ln1_b"],
      qkv2_w, qkv2_b,
      params["o_w"], params["o_b"],
      params["ln2_w"], params["ln2_b"],
      params["gate_w"], params["w13"], params["w2"],
      params["norm_w"], params["norm_b"])


# ----------------------------- parameters ---------------------------------------
def init_params(key):
    ks = jax.random.split(key, 8)

    def w(k, shape):
        # matmul weights stored in bf16 (MXU-native, halves HBM->VMEM DMA);
        # accumulation stays f32 via preferred_element_type in the kernel.
        return (jax.random.normal(k, shape, jnp.float32) * 0.02).astype(jnp.bfloat16)

    return {
        "embed": jax.random.normal(ks[0], (VOCAB, HIDDEN), jnp.float32) * 0.02,
        "norm_w": jnp.ones((1, HIDDEN), jnp.float32),
        "norm_b": jnp.zeros((1, HIDDEN), jnp.float32),
        "ln1_w": jnp.ones((N_LAYERS, 1, HIDDEN), jnp.float32),
        "ln1_b": jnp.zeros((N_LAYERS, 1, HIDDEN), jnp.float32),
        "ln2_w": jnp.ones((N_LAYERS, 1, HIDDEN), jnp.float32),
        "ln2_b": jnp.zeros((N_LAYERS, 1, HIDDEN), jnp.float32),
        "qkv_w": w(ks[1], (N_LAYERS, HIDDEN, QKV_SIZE)),
        "qkv_b": jax.random.normal(ks[2], (N_LAYERS, 1, QKV_SIZE), jnp.float32) * 0.02,
        "o_w": w(ks[3], (N_LAYERS, Q_SIZE, HIDDEN)),
        "o_b": jax.random.normal(ks[4], (N_LAYERS, 1, HIDDEN), jnp.float32) * 0.02,
        "gate_w": w(ks[5], (N_LAYERS, HIDDEN, N_EXPERTS)),
        # w13 stacked: lanes [0, E*I) = w1 (gate) of experts 0..E-1,
        #              lanes [E*I, 2*E*I) = w3 (up) of experts 0..E-1.
        "w13": w(ks[6], (N_LAYERS, HIDDEN, 2 * EI)),
        # w2 stacked along the contraction dim: rows [e*I, (e+1)*I) = expert e.
        "w2": w(ks[7], (N_LAYERS, EI, HIDDEN)),
    }


# ----------------------------- main ----------------------------------------------
if __name__ == "__main__":
    key = jax.random.PRNGKey(0)
    pkey, ikey = jax.random.split(key)
    params = init_params(pkey)

    input_ids = jax.random.randint(ikey, (SEQ,), 0, VOCAB, dtype=jnp.int32)
    positions = jnp.arange(SEQ, dtype=jnp.int32)

    out = jax.jit(phimoe_forward)(params, input_ids, positions)
    out = jax.block_until_ready(out)

    assert out.shape == (SEQ, HIDDEN), out.shape
    assert jnp.all(jnp.isfinite(out)), "non-finite output"
    print("KERNEL_OK")
</pallas_src>

<mosaic_0001>
module attributes {stable_mosaic.version = 11 : i64} {
  func.func @_phimoe_layers_kernel(%arg0: i32, %arg1: memref<8x64xf32, #tpu.memory_space<vmem>>, %arg2: memref<8x128xf32, #tpu.memory_space<vmem>>, %arg3: memref<8x128xf32, #tpu.memory_space<vmem>>, %arg4: memref<8x8xf32, #tpu.memory_space<vmem>>, %arg5: memref<4x512xf32, #tpu.memory_space<vmem>>, %arg6: memref<1x1x64xf32, #tpu.memory_space<vmem>>, %arg7: memref<1x1x64xf32, #tpu.memory_space<vmem>>, %arg8: memref<1x64x256xbf16, #tpu.memory_space<vmem>>, %arg9: memref<1x1x256xf32, #tpu.memory_space<vmem>>, %arg10: memref<1x64x64xbf16, #tpu.memory_space<vmem>>, %arg11: memref<1x1x64xf32, #tpu.memory_space<vmem>>, %arg12: memref<1x1x64xf32, #tpu.memory_space<vmem>>, %arg13: memref<1x1x64xf32, #tpu.memory_space<vmem>>, %arg14: memref<1x64x4xbf16, #tpu.memory_space<vmem>>, %arg15: memref<1x64x1024xbf16, #tpu.memory_space<vmem>>, %arg16: memref<1x512x64xbf16, #tpu.memory_space<vmem>>, %arg17: memref<1x64xf32, #tpu.memory_space<vmem>>, %arg18: memref<1x64xf32, #tpu.memory_space<vmem>>, %arg19: memref<8x64xf32, #tpu.memory_space<vmem>>) attributes {dimension_semantics = [#tpu.dimension_semantics<arbitrary>], iteration_bounds = array<i64: 2>, scalar_prefetch = 0 : i64, scratch_operands = 0 : i64, tpu.core_type = #tpu.core_type<tc>, window_params = [{pipeline_mode = #tpu.pipeline_mode<synchronous>, transform_indices = @transform_0, window_bounds = array<i64: 8, 64>}, {pipeline_mode = #tpu.pipeline_mode<synchronous>, transform_indices = @transform_1, window_bounds = array<i64: 8, 128>}, {pipeline_mode = #tpu.pipeline_mode<synchronous>, transform_indices = @transform_2, window_bounds = array<i64: 8, 128>}, {pipeline_mode = #tpu.pipeline_mode<synchronous>, transform_indices = @transform_3, window_bounds = array<i64: 8, 8>}, {pipeline_mode = #tpu.pipeline_mode<synchronous>, transform_indices = @transform_4, window_bounds = array<i64: 4, 512>}, {transform_indices = @transform_5, window_bounds = array<i64: 1, 1, 64>}, {transform_indices = @transform_6, window_bounds = array<i64: 1, 1, 64>}, {transform_indices = @transform_7, window_bounds = array<i64: 1, 64, 256>}, {transform_indices = @transform_8, window_bounds = array<i64: 1, 1, 256>}, {transform_indices = @transform_9, window_bounds = array<i64: 1, 64, 64>}, {transform_indices = @transform_10, window_bounds = array<i64: 1, 1, 64>}, {transform_indices = @transform_11, window_bounds = array<i64: 1, 1, 64>}, {transform_indices = @transform_12, window_bounds = array<i64: 1, 1, 64>}, {transform_indices = @transform_13, window_bounds = array<i64: 1, 64, 4>}, {transform_indices = @transform_14, window_bounds = array<i64: 1, 64, 1024>}, {transform_indices = @transform_15, window_bounds = array<i64: 1, 512, 64>}, {pipeline_mode = #tpu.pipeline_mode<synchronous>, transform_indices = @transform_16, window_bounds = array<i64: 1, 64>}, {pipeline_mode = #tpu.pipeline_mode<synchronous>, transform_indices = @transform_17, window_bounds = array<i64: 1, 64>}, {pipeline_mode = #tpu.pipeline_mode<synchronous>, transform_indices = @transform_18, window_bounds = array<i64: 8, 64>}]} {
    %c0_i32 = arith.constant 0 : i32
    %0 = arith.cmpi eq, %arg0, %c0_i32 : i32
    %1 = arith.extui %0 : i1 to i32
    %c0_i32_0 = arith.constant 0 : i32
    %2 = arith.cmpi ne, %1, %c0_i32_0 : i32
    scf.if %2 {
      %c0_112 = arith.constant 0 : index
      %c0_113 = arith.constant 0 : index
      %271 = vector.load %arg1[%c0_112, %c0_113] : memref<8x64xf32, #tpu.memory_space<vmem>>, vector<8x64xf32>
      %c0_114 = arith.constant 0 : index
      %c0_115 = arith.constant 0 : index
      %272 = vector.load %arg19[%c0_114, %c0_115] : memref<8x64xf32, #tpu.memory_space<vmem>>, vector<8x64xf32>
      tpu.vector_store %arg19[%c0_114, %c0_115], %271 {strides = array<i32>} : memref<8x64xf32, #tpu.memory_space<vmem>>, vector<8x64xf32>,
    } else {
    }
    %c0 = arith.constant 0 : index
    %c0_1 = arith.constant 0 : index
    %3 = vector.load %arg19[%c0, %c0_1] : memref<8x64xf32, #tpu.memory_space<vmem>>, vector<8x64xf32>
    %c0_2 = arith.constant 0 : index
    %c0_3 = arith.constant 0 : index
    %4 = vector.load %arg4[%c0_2, %c0_3] : memref<8x8xf32, #tpu.memory_space<vmem>>, vector<8x8xf32>
    %c0_4 = arith.constant 0 : index
    %c0_5 = arith.constant 0 : index
    %c0_6 = arith.constant 0 : index
    %5 = vector.load %arg6[%c0_4, %c0_5, %c0_6] : memref<1x1x64xf32, #tpu.memory_space<vmem>>, vector<1x1x64xf32>
    %6 = vector.shape_cast %5 : vector<1x1x64xf32> to vector<1x64xf32>
    %c0_7 = arith.constant 0 : index
    %c0_8 = arith.constant 0 : index
    %c0_9 = arith.constant 0 : index
    %7 = vector.load %arg7[%c0_7, %c0_8, %c0_9] : memref<1x1x64xf32, #tpu.memory_space<vmem>>, vector<1x1x64xf32>
    %8 = vector.shape_cast %7 : vector<1x1x64xf32> to vector<1x64xf32>
    %cst = arith.constant dense<0.000000e+00> : vector<8xf32>
    %9 = vector.multi_reduction <add>, %3, %cst [1] : vector<8x64xf32> to vector<8xf32>
    %10 = vector.shape_cast %9 : vector<8xf32> to vector<8x1xf32>
    %cst_10 = arith.constant 6.400000e+01 : f32
    %11 = vector.broadcast %cst_10 : f32 to vector<8x1xf32>
    %12 = arith.divf %10, %11 : vector<8x1xf32>
    %13 = vector.broadcast %12 : vector<8x1xf32> to vector<8x64xf32>
    %14 = arith.subf %3, %13 : vector<8x64xf32>
    %15 = arith.mulf %14, %14 : vector<8x64xf32>
    %cst_11 = arith.constant dense<0.000000e+00> : vector<8xf32>
    %16 = vector.multi_reduction <add>, %15, %cst_11 [1] : vector<8x64xf32> to vector<8xf32>
    %17 = vector.shape_cast %16 : vector<8xf32> to vector<8x1xf32>
    %cst_12 = arith.constant 6.400000e+01 : f32
    %18 = vector.broadcast %cst_12 : f32 to vector<8x1xf32>
    %19 = arith.divf %17, %18 : vector<8x1xf32>
    %20 = vector.broadcast %12 : vector<8x1xf32> to vector<8x64xf32>
    %21 = arith.subf %3, %20 : vector<8x64xf32>
    %cst_13 = arith.constant 9.99999974E-6 : f32
    %22 = vector.broadcast %cst_13 : f32 to vector<8x1xf32>
    %23 = arith.addf %19, %22 : vector<8x1xf32>
    %24 = math.rsqrt %23 : vector<8x1xf32>
    %25 = vector.broadcast %24 : vector<8x1xf32> to vector<8x64xf32>
    %26 = arith.mulf %21, %25 : vector<8x64xf32>
    %27 = vector.broadcast %6 : vector<1x64xf32> to vector<8x64xf32>
    %28 = arith.mulf %26, %27 : vector<8x64xf32>
    %29 = vector.broadcast %8 : vector<1x64xf32> to vector<8x64xf32>
    %30 = arith.addf %28, %29 : vector<8x64xf32>
    %31 = arith.truncf %30 : vector<8x64xf32> to vector<8x64xbf16>
    %c0_14 = arith.constant 0 : index
    %c0_15 = arith.constant 0 : index
    %c0_16 = arith.constant 0 : index
    %32 = vector.load %arg8[%c0_14, %c0_15, %c0_16] : memref<1x64x256xbf16, #tpu.memory_space<vmem>>, vector<1x64x256xbf16>
    %33 = vector.shape_cast %32 : vector<1x64x256xbf16> to vector<64x256xbf16>
    %cst_17 = arith.constant dense<0.000000e+00> : vector<8x256xf32>
    %34 = tpu.matmul %31, %33, %cst_17 {dimension_numbers = #tpu.dot_dimension_numbers<[1], [0], [0], [1], [0, 0, 1, 1], [], []>} : vector<8x64xbf16>, vector<64x256xbf16>, vector<8x256xf32> -> vector<8x256xf32>
    %c0_18 = arith.constant 0 : index
    %c0_19 = arith.constant 0 : index
    %c0_20 = arith.constant 0 : index
    %35 = vector.load %arg9[%c0_18, %c0_19, %c0_20] : memref<1x1x256xf32, #tpu.memory_space<vmem>>, vector<1x1x256xf32>
    %36 = vector.shape_cast %35 : vector<1x1x256xf32> to vector<1x256xf32>
    %37 = vector.broadcast %36 : vector<1x256xf32> to vector<8x256xf32>
    %38 = arith.addf %34, %37 : vector<8x256xf32>
    %39 = vector.extract_strided_slice %38 {offsets = [0, 0], sizes = [8, 128], strides = [1, 1]} : vector<8x256xf32> to vector<8x128xf32>
    %40 = vector.extract_strided_slice %38 {offsets = [0, 128], sizes = [8, 128], strides = [1, 1]} : vector<8x256xf32> to vector<8x128xf32>
    %c0_21 = arith.constant 0 : index
    %c0_22 = arith.constant 0 : index
    %41 = vector.load %arg2[%c0_21, %c0_22] : memref<8x128xf32, #tpu.memory_space<vmem>>, vector<8x128xf32>
    %42 = arith.mulf %39, %41 : vector<8x128xf32>
    %c0_23 = arith.constant 0 : index
    %c0_24 = arith.constant 0 : index
    %43 = vector.load %arg3[%c0_23, %c0_24] : memref<8x128xf32, #tpu.memory_space<vmem>>, vector<8x128xf32>
    %44 = arith.mulf %40, %43 : vector<8x128xf32>
    %45 = arith.addf %42, %44 : vector<8x128xf32>
    %46 = vector.extract_strided_slice %45 {offsets = [0, 0], sizes = [8, 64], strides = [1, 1]} : vector<8x128xf32> to vector<8x64xf32>
    %47 = vector.extract_strided_slice %45 {offsets = [0, 64], sizes = [8, 32], strides = [1, 1]} : vector<8x128xf32> to vector<8x32xf32>
    %48 = vector.extract_strided_slice %45 {offsets = [0, 96], sizes = [8, 32], strides = [1, 1]} : vector<8x128xf32> to vector<8x32xf32>
    %49 = vector.extract_strided_slice %47 {offsets = [0, 0], sizes = [8, 16], strides = [1, 1]} : vector<8x32xf32> to vector<8x16xf32>
    %50 = vector.extract_strided_slice %47 {offsets = [0, 16], sizes = [8, 16], strides = [1, 1]} : vector<8x32xf32> to vector<8x16xf32>
    %51 = vector.extract_strided_slice %48 {offsets = [0, 0], sizes = [8, 16], strides = [1, 1]} : vector<8x32xf32> to vector<8x16xf32>
    %52 = vector.extract_strided_slice %48 {offsets = [0, 16], sizes = [8, 16], strides = [1, 1]} : vector<8x32xf32> to vector<8x16xf32>
    %cst_25 = arith.constant 0.000000e+00 : f32
    %53 = vector.broadcast %cst_25 : f32 to vector<8x64xf32>
    %54 = vector.extract_strided_slice %46 {offsets = [0, 0], sizes = [8, 16], strides = [1, 1]} : vector<8x64xf32> to vector<8x16xf32>
    %cst_26 = arith.constant dense<0.000000e+00> : vector<8x8xf32>
    %55 = tpu.matmul %54, %49, %cst_26 {dimension_numbers = #tpu.dot_dimension_numbers<[1], [1], [0], [0], [0, 0, 1, 0], [], []>} : vector<8x16xf32>, vector<8x16xf32>, vector<8x8xf32> -> vector<8x8xf32>
    %cst_27 = arith.constant 2.500000e-01 : f32
    %56 = vector.broadcast %cst_27 : f32 to vector<8x8xf32>
    %57 = arith.mulf %55, %56 : vector<8x8xf32>
    %58 = arith.addf %57, %4 : vector<8x8xf32>
    %cst_28 = arith.constant dense<0xFF800000> : vector<8xf32>
    %59 = vector.multi_reduction <maximumf>, %58, %cst_28 [1] : vector<8x8xf32> to vector<8xf32>
    %60 = vector.shape_cast %59 : vector<8xf32> to vector<8x1xf32>
    %61 = vector.broadcast %60 : vector<8x1xf32> to vector<8x8xf32>
    %62 = arith.subf %58, %61 : vector<8x8xf32>
    %63 = math.exp %62 : vector<8x8xf32>
    %cst_29 = arith.constant dense<0.000000e+00> : vector<8xf32>
    %64 = vector.multi_reduction <add>, %63, %cst_29 [1] : vector<8x8xf32> to vector<8xf32>
    %65 = vector.shape_cast %64 : vector<8xf32> to vector<8x1xf32>
    %66 = vector.broadcast %65 : vector<8x1xf32> to vector<8x8xf32>
    %67 = arith.divf %63, %66 : vector<8x8xf32>
    %cst_30 = arith.constant dense<0.000000e+00> : vector<8x16xf32>
    %68 = tpu.matmul %67, %51, %cst_30 {dimension_numbers = #tpu.dot_dimension_numbers<[1], [0], [0], [1], [0, 0, 1, 1], [], []>} : vector<8x8xf32>, vector<8x16xf32>, vector<8x16xf32> -> vector<8x16xf32>
    %69 = arith.truncf %68 : vector<8x16xf32> to vector<8x16xbf16>
    %c0_31 = arith.constant 0 : index
    %c0_32 = arith.constant 0 : index
    %c0_33 = arith.constant 0 : index
    %70 = vector.load %arg10[%c0_31, %c0_32, %c0_33] : memref<1x64x64xbf16, #tpu.memory_space<vmem>>, vector<1x16x64xbf16>
    %71 = vector.shape_cast %70 : vector<1x16x64xbf16> to vector<16x64xbf16>
    %cst_34 = arith.constant dense<0.000000e+00> : vector<8x64xf32>
    %72 = tpu.matmul %69, %71, %cst_34 {dimension_numbers = #tpu.dot_dimension_numbers<[1], [0], [0], [1], [0, 0, 1, 1], [], []>} : vector<8x16xbf16>, vector<16x64xbf16>, vector<8x64xf32> -> vector<8x64xf32>
    %73 = arith.addf %53, %72 : vector<8x64xf32>
    %74 = vector.extract_strided_slice %46 {offsets = [0, 16], sizes = [8, 16], strides = [1, 1]} : vector<8x64xf32> to vector<8x16xf32>
    %cst_35 = arith.constant dense<0.000000e+00> : vector<8x8xf32>
    %75 = tpu.matmul %74, %49, %cst_35 {dimension_numbers = #tpu.dot_dimension_numbers<[1], [1], [0], [0], [0, 0, 1, 0], [], []>} : vector<8x16xf32>, vector<8x16xf32>, vector<8x8xf32> -> vector<8x8xf32>
    %cst_36 = arith.constant 2.500000e-01 : f32
    %76 = vector.broadcast %cst_36 : f32 to vector<8x8xf32>
    %77 = arith.mulf %75, %76 : vector<8x8xf32>
    %78 = arith.addf %77, %4 : vector<8x8xf32>
    %cst_37 = arith.constant dense<0xFF800000> : vector<8xf32>
    %79 = vector.multi_reduction <maximumf>, %78, %cst_37 [1] : vector<8x8xf32> to vector<8xf32>
    %80 = vector.shape_cast %79 : vector<8xf32> to vector<8x1xf32>
    %81 = vector.broadcast %80 : vector<8x1xf32> to vector<8x8xf32>
    %82 = arith.subf %78, %81 : vector<8x8xf32>
    %83 = math.exp %82 : vector<8x8xf32>
    %cst_38 = arith.constant dense<0.000000e+00> : vector<8xf32>
    %84 = vector.multi_reduction <add>, %83, %cst_38 [1] : vector<8x8xf32> to vector<8xf32>
    %85 = vector.shape_cast %84 : vector<8xf32> to vector<8x1xf32>
    %86 = vector.broadcast %85 : vector<8x1xf32> to vector<8x8xf32>
    %87 = arith.divf %83, %86 : vector<8x8xf32>
    %cst_39 = arith.constant dense<0.000000e+00> : vector<8x16xf32>
    %88 = tpu.matmul %87, %51, %cst_39 {dimension_numbers = #tpu.dot_dimension_numbers<[1], [0], [0], [1], [0, 0, 1, 1], [], []>} : vector<8x8xf32>, vector<8x16xf32>, vector<8x16xf32> -> vector<8x16xf32>
    %89 = arith.truncf %88 : vector<8x16xf32> to vector<8x16xbf16>
    %c0_40 = arith.constant 0 : index
    %c16 = arith.constant 16 : index
    %c0_41 = arith.constant 0 : index
    %90 = vector.load %arg10[%c0_40, %c16, %c0_41] : memref<1x64x64xbf16, #tpu.memory_space<vmem>>, vector<1x16x64xbf16>
    %91 = vector.shape_cast %90 : vector<1x16x64xbf16> to vector<16x64xbf16>
    %cst_42 = arith.constant dense<0.000000e+00> : vector<8x64xf32>
    %92 = tpu.matmul %89, %91, %cst_42 {dimension_numbers = #tpu.dot_dimension_numbers<[1], [0], [0], [1], [0, 0, 1, 1], [], []>} : vector<8x16xbf16>, vector<16x64xbf16>, vector<8x64xf32> -> vector<8x64xf32>
    %93 = arith.addf %73, %92 : vector<8x64xf32>
    %94 = vector.extract_strided_slice %46 {offsets = [0, 32], sizes = [8, 16], strides = [1, 1]} : vector<8x64xf32> to vector<8x16xf32>
    %cst_43 = arith.constant dense<0.000000e+00> : vector<8x8xf32>
    %95 = tpu.matmul %94, %50, %cst_43 {dimension_numbers = #tpu.dot_dimension_numbers<[1], [1], [0], [0], [0, 0, 1, 0], [], []>} : vector<8x16xf32>, vector<8x16xf32>, vector<8x8xf32> -> vector<8x8xf32>
    %cst_44 = arith.constant 2.500000e-01 : f32
    %96 = vector.broadcast %cst_44 : f32 to vector<8x8xf32>
    %97 = arith.mulf %95, %96 : vector<8x8xf32>
    %98 = arith.addf %97, %4 : vector<8x8xf32>
    %cst_45 = arith.constant dense<0xFF800000> : vector<8xf32>
    %99 = vector.multi_reduction <maximumf>, %98, %cst_45 [1] : vector<8x8xf32> to vector<8xf32>
    %100 = vector.shape_cast %99 : vector<8xf32> to vector<8x1xf32>
    %101 = vector.broadcast %100 : vector<8x1xf32> to vector<8x8xf32>
    %102 = arith.subf %98, %101 : vector<8x8xf32>
    %103 = math.exp %102 : vector<8x8xf32>
    %cst_46 = arith.constant dense<0.000000e+00> : vector<8xf32>
    %104 = vector.multi_reduction <add>, %103, %cst_46 [1] : vector<8x8xf32> to vector<8xf32>
    %105 = vector.shape_cast %104 : vector<8xf32> to vector<8x1xf32>
    %106 = vector.broadcast %105 : vector<8x1xf32> to vector<8x8xf32>
    %107 = arith.divf %103, %106 : vector<8x8xf32>
    %cst_47 = arith.constant dense<0.000000e+00> : vector<8x16xf32>
    %108 = tpu.matmul %107, %52, %cst_47 {dimension_numbers = #tpu.dot_dimension_numbers<[1], [0], [0], [1], [0, 0, 1, 1], [], []>} : vector<8x8xf32>, vector<8x16xf32>, vector<8x16xf32> -> vector<8x16xf32>
    %109 = arith.truncf %108 : vector<8x16xf32> to vector<8x16xbf16>
    %c0_48 = arith.constant 0 : index
    %c32 = arith.constant 32 : index
    %c0_49 = arith.constant 0 : index
    %110 = vector.load %arg10[%c0_48, %c32, %c0_49] : memref<1x64x64xbf16, #tpu.memory_space<vmem>>, vector<1x16x64xbf16>
    %111 = vector.shape_cast %110 : vector<1x16x64xbf16> to vector<16x64xbf16>
    %cst_50 = arith.constant dense<0.000000e+00> : vector<8x64xf32>
    %112 = tpu.matmul %109, %111, %cst_50 {dimension_numbers = #tpu.dot_dimension_numbers<[1], [0], [0], [1], [0, 0, 1, 1], [], []>} : vector<8x16xbf16>, vector<16x64xbf16>, vector<8x64xf32> -> vector<8x64xf32>
    %113 = arith.addf %93, %112 : vector<8x64xf32>
    %114 = vector.extract_strided_slice %46 {offsets = [0, 48], sizes = [8, 16], strides = [1, 1]} : vector<8x64xf32> to vector<8x16xf32>
    %cst_51 = arith.constant dense<0.000000e+00> : vector<8x8xf32>
    %115 = tpu.matmul %114, %50, %cst_51 {dimension_numbers = #tpu.dot_dimension_numbers<[1], [1], [0], [0], [0, 0, 1, 0], [], []>} : vector<8x16xf32>, vector<8x16xf32>, vector<8x8xf32> -> vector<8x8xf32>
    %cst_52 = arith.constant 2.500000e-01 : f32
    %116 = vector.broadcast %cst_52 : f32 to vector<8x8xf32>
    %117 = arith.mulf %115, %116 : vector<8x8xf32>
    %118 = arith.addf %117, %4 : vector<8x8xf32>
    %cst_53 = arith.constant dense<0xFF800000> : vector<8xf32>
    %119 = vector.multi_reduction <maximumf>, %118, %cst_53 [1] : vector<8x8xf32> to vector<8xf32>
    %120 = vector.shape_cast %119 : vector<8xf32> to vector<8x1xf32>
    %121 = vector.broadcast %120 : vector<8x1xf32> to vector<8x8xf32>
    %122 = arith.subf %118, %121 : vector<8x8xf32>
    %123 = math.exp %122 : vector<8x8xf32>
    %cst_54 = arith.constant dense<0.000000e+00> : vector<8xf32>
    %124 = vector.multi_reduction <add>, %123, %cst_54 [1] : vector<8x8xf32> to vector<8xf32>
    %125 = vector.shape_cast %124 : vector<8xf32> to vector<8x1xf32>
    %126 = vector.broadcast %125 : vector<8x1xf32> to vector<8x8xf32>
    %127 = arith.divf %123, %126 : vector<8x8xf32>
    %cst_55 = arith.constant dense<0.000000e+00> : vector<8x16xf32>
    %128 = tpu.matmul %127, %52, %cst_55 {dimension_numbers = #tpu.dot_dimension_numbers<[1], [0], [0], [1], [0, 0, 1, 1], [], []>} : vector<8x8xf32>, vector<8x16xf32>, vector<8x16xf32> -> vector<8x16xf32>
    %129 = arith.truncf %128 : vector<8x16xf32> to vector<8x16xbf16>
    %c0_56 = arith.constant 0 : index
    %c48 = arith.constant 48 : index
    %c0_57 = arith.constant 0 : index
    %130 = vector.load %arg10[%c0_56, %c48, %c0_57] : memref<1x64x64xbf16, #tpu.memory_space<vmem>>, vector<1x16x64xbf16>
    %131 = vector.shape_cast %130 : vector<1x16x64xbf16> to vector<16x64xbf16>
    %cst_58 = arith.constant dense<0.000000e+00> : vector<8x64xf32>
    %132 = tpu.matmul %129, %131, %cst_58 {dimension_numbers = #tpu.dot_dimension_numbers<[1], [0], [0], [1], [0, 0, 1, 1], [], []>} : vector<8x16xbf16>, vector<16x64xbf16>, vector<8x64xf32> -> vector<8x64xf32>
    %133 = arith.addf %113, %132 : vector<8x64xf32>
    %c0_59 = arith.constant 0 : index
    %c0_60 = arith.constant 0 : index
    %c0_61 = arith.constant 0 : index
    %134 = vector.load %arg11[%c0_59, %c0_60, %c0_61] : memref<1x1x64xf32, #tpu.memory_space<vmem>>, vector<1x1x64xf32>
    %135 = vector.shape_cast %134 : vector<1x1x64xf32> to vector<1x64xf32>
    %136 = vector.broadcast %135 : vector<1x64xf32> to vector<8x64xf32>
    %137 = arith.addf %133, %136 : vector<8x64xf32>
    %138 = arith.addf %137, %3 : vector<8x64xf32>
    %c0_62 = arith.constant 0 : index
    %c0_63 = arith.constant 0 : index
    %c0_64 = arith.constant 0 : index
    %139 = vector.load %arg12[%c0_62, %c0_63, %c0_64] : memref<1x1x64xf32, #tpu.memory_space<vmem>>, vector<1x1x64xf32>
    %140 = vector.shape_cast %139 : vector<1x1x64xf32> to vector<1x64xf32>
    %c0_65 = arith.constant 0 : index
    %c0_66 = arith.constant 0 : index
    %c0_67 = arith.constant 0 : index
    %141 = vector.load %arg13[%c0_65, %c0_66, %c0_67] : memref<1x1x64xf32, #tpu.memory_space<vmem>>, vector<1x1x64xf32>
    %142 = vector.shape_cast %141 : vector<1x1x64xf32> to vector<1x64xf32>
    %cst_68 = arith.constant dense<0.000000e+00> : vector<8xf32>
    %143 = vector.multi_reduction <add>, %138, %cst_68 [1] : vector<8x64xf32> to vector<8xf32>
    %144 = vector.shape_cast %143 : vector<8xf32> to vector<8x1xf32>
    %cst_69 = arith.constant 6.400000e+01 : f32
    %145 = vector.broadcast %cst_69 : f32 to vector<8x1xf32>
    %146 = arith.divf %144, %145 : vector<8x1xf32>
    %147 = vector.broadcast %146 : vector<8x1xf32> to vector<8x64xf32>
    %148 = arith.subf %138, %147 : vector<8x64xf32>
    %149 = arith.mulf %148, %148 : vector<8x64xf32>
    %cst_70 = arith.constant dense<0.000000e+00> : vector<8xf32>
    %150 = vector.multi_reduction <add>, %149, %cst_70 [1] : vector<8x64xf32> to vector<8xf32>
    %151 = vector.shape_cast %150 : vector<8xf32> to vector<8x1xf32>
    %cst_71 = arith.constant 6.400000e+01 : f32
    %152 = vector.broadcast %cst_71 : f32 to vector<8x1xf32>
    %153 = arith.divf %151, %152 : vector<8x1xf32>
    %154 = vector.broadcast %146 : vector<8x1xf32> to vector<8x64xf32>
    %155 = arith.subf %138, %154 : vector<8x64xf32>
    %cst_72 = arith.constant 9.99999974E-6 : f32
    %156 = vector.broadcast %cst_72 : f32 to vector<8x1xf32>
    %157 = arith.addf %153, %156 : vector<8x1xf32>
    %158 = math.rsqrt %157 : vector<8x1xf32>
    %159 = vector.broadcast %158 : vector<8x1xf32> to vector<8x64xf32>
    %160 = arith.mulf %155, %159 : vector<8x64xf32>
    %161 = vector.broadcast %140 : vector<1x64xf32> to vector<8x64xf32>
    %162 = arith.mulf %160, %161 : vector<8x64xf32>
    %163 = vector.broadcast %142 : vector<1x64xf32> to vector<8x64xf32>
    %164 = arith.addf %162, %163 : vector<8x64xf32>
    %165 = arith.truncf %164 : vector<8x64xf32> to vector<8x64xbf16>
    %c0_73 = arith.constant 0 : index
    %c0_74 = arith.constant 0 : index
    %c0_75 = arith.constant 0 : index
    %166 = vector.load %arg14[%c0_73, %c0_74, %c0_75] : memref<1x64x4xbf16, #tpu.memory_space<vmem>>, vector<1x64x4xbf16>
    %167 = vector.shape_cast %166 : vector<1x64x4xbf16> to vector<64x4xbf16>
    %cst_76 = arith.constant dense<0.000000e+00> : vector<8x4xf32>
    %168 = tpu.matmul %165, %167, %cst_76 {dimension_numbers = #tpu.dot_dimension_numbers<[1], [0], [0], [1], [0, 0, 1, 1], [], []>} : vector<8x64xbf16>, vector<64x4xbf16>, vector<8x4xf32> -> vector<8x4xf32>
    %169 = tpu.iota {dimensions = array<i32: 1>} : vector<8x4xi32>
    %cst_77 = arith.constant dense<0xFF800000> : vector<8xf32>
    %170 = vector.multi_reduction <maximumf>, %168, %cst_77 [1] : vector<8x4xf32> to vector<8xf32>
    %171 = vector.shape_cast %170 : vector<8xf32> to vector<8x1xf32>
    %172 = vector.broadcast %171 : vector<8x1xf32> to vector<8x4xf32>
    %173 = arith.cmpf oge, %168, %172 : vector<8x4xf32>
    %c4_i32 = arith.constant 4 : i32
    %174 = vector.broadcast %c4_i32 : i32 to vector<8x4xi32>
    %175 = arith.select %173, %169, %174 : vector<8x4xi1>, vector<8x4xi32>
    %cst_78 = arith.constant dense<2147483647> : vector<8xi32>
    %176 = vector.multi_reduction <minsi>, %175, %cst_78 [1] : vector<8x4xi32> to vector<8xi32>
    %177 = vector.shape_cast %176 : vector<8xi32> to vector<8x1xi32>
    %178 = vector.broadcast %177 : vector<8x1xi32> to vector<8x4xi32>
    %179 = arith.cmpi eq, %169, %178 : vector<8x4xi32>
    %180 = math.absf %168 : vector<8x4xf32>
    %181 = vector.broadcast %171 : vector<8x1xf32> to vector<8x4xf32>
    %182 = arith.maximumf %180, %181 : vector<8x4xf32>
    %183 = vector.broadcast %171 : vector<8x1xf32> to vector<8x4xf32>
    %184 = arith.subf %183, %168 : vector<8x4xf32>
    %185 = arith.divf %184, %182 : vector<8x4xf32>
    %cst_79 = arith.constant 2.000000e-02 : f32
    %186 = vector.broadcast %cst_79 : f32 to vector<8x4xf32>
    %187 = arith.cmpf ogt, %185, %186 : vector<8x4xf32>
    %cst_80 = arith.constant 0xFF800000 : f32
    %188 = vector.broadcast %cst_80 : f32 to vector<8x4xf32>
    %189 = arith.select %187, %188, %168 : vector<8x4xi1>, vector<8x4xf32>
    %cst_81 = arith.constant dense<0xFF800000> : vector<8xf32>
    %190 = vector.multi_reduction <maximumf>, %189, %cst_81 [1] : vector<8x4xf32> to vector<8xf32>
    %191 = vector.shape_cast %190 : vector<8xf32> to vector<8x1xf32>
    %192 = vector.broadcast %191 : vector<8x1xf32> to vector<8x4xf32>
    %193 = arith.subf %189, %192 : vector<8x4xf32>
    %194 = math.exp %193 : vector<8x4xf32>
    %cst_82 = arith.constant dense<0.000000e+00> : vector<8xf32>
    %195 = vector.multi_reduction <add>, %194, %cst_82 [1] : vector<8x4xf32> to vector<8xf32>
    %196 = vector.shape_cast %195 : vector<8xf32> to vector<8x1xf32>
    %197 = vector.broadcast %196 : vector<8x1xf32> to vector<8x4xf32>
    %198 = arith.divf %194, %197 : vector<8x4xf32>
    %cst_83 = arith.constant 0.000000e+00 : f32
    %199 = vector.broadcast %cst_83 : f32 to vector<8x4xf32>
    %200 = arith.select %179, %198, %199 : vector<8x4xi1>, vector<8x4xf32>
    %cst_84 = arith.constant dense<0.000000e+00> : vector<8xf32>
    %201 = vector.multi_reduction <add>, %200, %cst_84 [1] : vector<8x4xf32> to vector<8xf32>
    %202 = vector.shape_cast %201 : vector<8xf32> to vector<8x1xf32>
    %cst_85 = arith.constant 0xFF800000 : f32
    %203 = vector.broadcast %cst_85 : f32 to vector<8x4xf32>
    %204 = arith.select %179, %203, %168 : vector<8x4xi1>, vector<8x4xf32>
    %cst_86 = arith.constant dense<0xFF800000> : vector<8xf32>
    %205 = vector.multi_reduction <maximumf>, %204, %cst_86 [1] : vector<8x4xf32> to vector<8xf32>
    %206 = vector.shape_cast %205 : vector<8xf32> to vector<8x1xf32>
    %207 = vector.broadcast %206 : vector<8x1xf32> to vector<8x4xf32>
    %208 = arith.cmpf oge, %204, %207 : vector<8x4xf32>
    %c4_i32_87 = arith.constant 4 : i32
    %209 = vector.broadcast %c4_i32_87 : i32 to vector<8x4xi32>
    %210 = arith.select %208, %169, %209 : vector<8x4xi1>, vector<8x4xi32>
    %cst_88 = arith.constant dense<2147483647> : vector<8xi32>
    %211 = vector.multi_reduction <minsi>, %210, %cst_88 [1] : vector<8x4xi32> to vector<8xi32>
    %212 = vector.shape_cast %211 : vector<8xi32> to vector<8x1xi32>
    %213 = vector.broadcast %212 : vector<8x1xi32> to vector<8x4xi32>
    %214 = arith.cmpi eq, %169, %213 : vector<8x4xi32>
    %215 = math.absf %168 : vector<8x4xf32>
    %216 = vector.broadcast %206 : vector<8x1xf32> to vector<8x4xf32>
    %217 = arith.maximumf %215, %216 : vector<8x4xf32>
    %218 = vector.broadcast %206 : vector<8x1xf32> to vector<8x4xf32>
    %219 = arith.subf %218, %168 : vector<8x4xf32>
    %220 = arith.divf %219, %217 : vector<8x4xf32>
    %cst_89 = arith.constant 2.000000e-02 : f32
    %221 = vector.broadcast %cst_89 : f32 to vector<8x4xf32>
    %222 = arith.cmpf ogt, %220, %221 : vector<8x4xf32>
    %cst_90 = arith.constant 0xFF800000 : f32
    %223 = vector.broadcast %cst_90 : f32 to vector<8x4xf32>
    %224 = arith.select %222, %223, %204 : vector<8x4xi1>, vector<8x4xf32>
    %cst_91 = arith.constant dense<0xFF800000> : vector<8xf32>
    %225 = vector.multi_reduction <maximumf>, %224, %cst_91 [1] : vector<8x4xf32> to vector<8xf32>
    %226 = vector.shape_cast %225 : vector<8xf32> to vector<8x1xf32>
    %227 = vector.broadcast %226 : vector<8x1xf32> to vector<8x4xf32>
    %228 = arith.subf %224, %227 : vector<8x4xf32>
    %229 = math.exp %228 : vector<8x4xf32>
    %cst_92 = arith.constant dense<0.000000e+00> : vector<8xf32>
    %230 = vector.multi_reduction <add>, %229, %cst_92 [1] : vector<8x4xf32> to vector<8xf32>
    %231 = vector.shape_cast %230 : vector<8xf32> to vector<8x1xf32>
    %232 = vector.broadcast %231 : vector<8x1xf32> to vector<8x4xf32>
    %233 = arith.divf %229, %232 : vector<8x4xf32>
    %cst_93 = arith.constant 0.000000e+00 : f32
    %234 = vector.broadcast %cst_93 : f32 to vector<8x4xf32>
    %235 = arith.select %214, %233, %234 : vector<8x4xi1>, vector<8x4xf32>
    %cst_94 = arith.constant dense<0.000000e+00> : vector<8xf32>
    %236 = vector.multi_reduction <add>, %235, %cst_94 [1] : vector<8x4xf32> to vector<8xf32>
    %237 = vector.shape_cast %236 : vector<8xf32> to vector<8x1xf32>
    %cst_95 = arith.constant 0.000000e+00 : f32
    %238 = vector.shape_cast %202 : vector<8x1xf32> to vector<8x1xf32>
    %239 = vector.broadcast %238 : vector<8x1xf32> to vector<8x4xf32>
    %240 = vector.broadcast %cst_95 : f32 to vector<8x4xf32>
    %241 = arith.select %179, %239, %240 : vector<8x4xi1>, vector<8x4xf32>
    %cst_96 = arith.constant 0.000000e+00 : f32
    %242 = vector.shape_cast %237 : vector<8x1xf32> to vector<8x1xf32>
    %243 = vector.broadcast %242 : vector<8x1xf32> to vector<8x4xf32>
    %244 = vector.broadcast %cst_96 : f32 to vector<8x4xf32>
    %245 = arith.select %214, %243, %244 : vector<8x4xi1>, vector<8x4xf32>
    %246 = arith.addf %241, %245 : vector<8x4xf32>
    %c0_97 = arith.constant 0 : index
    %c0_98 = arith.constant 0 : index
    %c0_99 = arith.constant 0 : index
    %247 = vector.load %arg15[%c0_97, %c0_98, %c0_99] : memref<1x64x1024xbf16, #tpu.memory_space<vmem>>, vector<1x64x1024xbf16>
    %248 = vector.shape_cast %247 : vector<1x64x1024xbf16> to vector<64x1024xbf16>
    %cst_100 = arith.constant dense<0.000000e+00> : vector<8x1024xf32>
    %249 = tpu.matmul %165, %248, %cst_100 {dimension_numbers = #tpu.dot_dimension_numbers<[1], [0], [0], [1], [0, 0, 1, 1], [], []>} : vector<8x64xbf16>, vector<64x1024xbf16>, vector<8x1024xf32> -> vector<8x1024xf32>
    %250 = vector.extract_strided_slice %249 {offsets = [0, 0], sizes = [8, 512], strides = [1, 1]} : vector<8x1024xf32> to vector<8x512xf32>
    %251 = vector.extract_strided_slice %249 {offsets = [0, 512], sizes = [8, 512], strides = [1, 1]} : vector<8x1024xf32> to vector<8x512xf32>
    %252 = arith.negf %250 : vector<8x512xf32>
    %253 = math.exp %252 : vector<8x512xf32>
    %cst_101 = arith.constant 1.000000e+00 : f32
    %254 = vector.broadcast %cst_101 : f32 to vector<8x512xf32>
    %255 = arith.addf %254, %253 : vector<8x512xf32>
    %256 = arith.divf %254, %255 : vector<8x512xf32>
    %257 = arith.mulf %250, %256 : vector<8x512xf32>
    %258 = arith.mulf %257, %251 : vector<8x512xf32>
    %c0_102 = arith.constant 0 : index
    %c0_103 = arith.constant 0 : index
    %259 = vector.load %arg5[%c0_102, %c0_103] : memref<4x512xf32, #tpu.memory_space<vmem>>, vector<4x512xf32>
    %cst_104 = arith.constant dense<0.000000e+00> : vector<8x512xf32>
    %260 = tpu.matmul %246, %259, %cst_104 {dimension_numbers = #tpu.dot_dimension_numbers<[1], [0], [0], [1], [0, 0, 1, 1], [], []>} : vector<8x4xf32>, vector<4x512xf32>, vector<8x512xf32> -> vector<8x512xf32>
    %261 = arith.mulf %258, %260 : vector<8x512xf32>
    %262 = arith.truncf %261 : vector<8x512xf32> to vector<8x512xbf16>
    %c0_105 = arith.constant 0 : index
    %c0_106 = arith.constant 0 : index
    %c0_107 = arith.constant 0 : index
    %263 = vector.load %arg16[%c0_105, %c0_106, %c0_107] : memref<1x512x64xbf16, #tpu.memory_space<vmem>>, vector<1x512x64xbf16>
    %264 = vector.shape_cast %263 : vector<1x512x64xbf16> to vector<512x64xbf16>
    %cst_108 = arith.constant dense<0.000000e+00> : vector<8x64xf32>
    %265 = tpu.matmul %262, %264, %cst_108 {dimension_numbers = #tpu.dot_dimension_numbers<[1], [0], [0], [1], [0, 0, 1, 1], [], []>} : vector<8x512xbf16>, vector<512x64xbf16>, vector<8x64xf32> -> vector<8x64xf32>
    %266 = arith.addf %265, %138 : vector<8x64xf32>
    %c0_109 = arith.constant 0 : index
    %c0_110 = arith.constant 0 : index
    %267 = vector.load %arg19[%c0_109, %c0_110] : memref<8x64xf32, #tpu.memory_space<vmem>>, vector<8x64xf32>
    tpu.vector_store %arg19[%c0_109, %c0_110], %266 {strides = array<i32>} : memref<8x64xf32, #tpu.memory_space<vmem>>, vector<8x64xf32>,
    %c1_i32 = arith.constant 1 : i32
    %268 = arith.cmpi eq, %arg0, %c1_i32 : i32
    %269 = arith.extui %268 : i1 to i32
    %c0_i32_111 = arith.constant 0 : i32
    %270 = arith.cmpi ne, %269, %c0_i32_111 : i32
    scf.if %270 {
      %c0_112 = arith.constant 0 : index
      %c0_113 = arith.constant 0 : index
      %271 = vector.load %arg17[%c0_112, %c0_113] : memref<1x64xf32, #tpu.memory_space<vmem>>, vector<1x64xf32>
      %c0_114 = arith.constant 0 : index
      %c0_115 = arith.constant 0 : index
      %272 = vector.load %arg18[%c0_114, %c0_115] : memref<1x64xf32, #tpu.memory_space<vmem>>, vector<1x64xf32>
      %cst_116 = arith.constant dense<0.000000e+00> : vector<8xf32>
      %273 = vector.multi_reduction <add>, %266, %cst_116 [1] : vector<8x64xf32> to vector<8xf32>
      %274 = vector.shape_cast %273 : vector<8xf32> to vector<8x1xf32>
      %cst_117 = arith.constant 6.400000e+01 : f32
      %275 = vector.broadcast %cst_117 : f32 to vector<8x1xf32>
      %276 = arith.divf %274, %275 : vector<8x1xf32>
      %277 = vector.broadcast %276 : vector<8x1xf32> to vector<8x64xf32>
      %278 = arith.subf %266, %277 : vector<8x64xf32>
      %279 = arith.mulf %278, %278 : vector<8x64xf32>
      %cst_118 = arith.constant dense<0.000000e+00> : vector<8xf32>
      %280 = vector.multi_reduction <add>, %279, %cst_118 [1] : vector<8x64xf32> to vector<8xf32>
      %281 = vector.shape_cast %280 : vector<8xf32> to vector<8x1xf32>
      %cst_119 = arith.constant 6.400000e+01 : f32
      %282 = vector.broadcast %cst_119 : f32 to vector<8x1xf32>
      %283 = arith.divf %281, %282 : vector<8x1xf32>
      %284 = vector.broadcast %276 : vector<8x1xf32> to vector<8x64xf32>
      %285 = arith.subf %266, %284 : vector<8x64xf32>
      %cst_120 = arith.constant 9.99999974E-6 : f32
      %286 = vector.broadcast %cst_120 : f32 to vector<8x1xf32>
      %287 = arith.addf %283, %286 : vector<8x1xf32>
      %288 = math.rsqrt %287 : vector<8x1xf32>
      %289 = vector.broadcast %288 : vector<8x1xf32> to vector<8x64xf32>
      %290 = arith.mulf %285, %289 : vector<8x64xf32>
      %291 = vector.broadcast %271 : vector<1x64xf32> to vector<8x64xf32>
      %292 = arith.mulf %290, %291 : vector<8x64xf32>
      %293 = vector.broadcast %272 : vector<1x64xf32> to vector<8x64xf32>
      %294 = arith.addf %292, %293 : vector<8x64xf32>
      %c0_121 = arith.constant 0 : index
      %c0_122 = arith.constant 0 : index
      %295 = vector.load %arg19[%c0_121, %c0_122] : memref<8x64xf32, #tpu.memory_space<vmem>>, vector<8x64xf32>
      tpu.vector_store %arg19[%c0_121, %c0_122], %294 {strides = array<i32>} : memref<8x64xf32, #tpu.memory_space<vmem>>, vector<8x64xf32>,
    } else {
    }
    return
  }
  func.func @transform_0(%arg0: i32) -> (i32, i32) {
    %c0_i32 = arith.constant 0 : i32
    %c0_i32_0 = arith.constant 0 : i32
    %c0_i32_1 = arith.constant 0 : i32
    return %c0_i32, %c0_i32_0 : i32, i32
  }
  func.func @transform_1(%arg0: i32) -> (i32, i32) {
    %c0_i32 = arith.constant 0 : i32
    %c0_i32_0 = arith.constant 0 : i32
    %c0_i32_1 = arith.constant 0 : i32
    return %c0_i32, %c0_i32_0 : i32, i32
  }
  func.func @transform_2(%arg0: i32) -> (i32, i32) {
    %c0_i32 = arith.constant 0 : i32
    %c0_i32_0 = arith.constant 0 : i32
    %c0_i32_1 = arith.constant 0 : i32
    return %c0_i32, %c0_i32_0 : i32, i32
  }
  func.func @transform_3(%arg0: i32) -> (i32, i32) {
    %c0_i32 = arith.constant 0 : i32
    %c0_i32_0 = arith.constant 0 : i32
    %c0_i32_1 = arith.constant 0 : i32
    return %c0_i32, %c0_i32_0 : i32, i32
  }
  func.func @transform_4(%arg0: i32) -> (i32, i32) {
    %c0_i32 = arith.constant 0 : i32
    %c0_i32_0 = arith.constant 0 : i32
    %c0_i32_1 = arith.constant 0 : i32
    return %c0_i32, %c0_i32_0 : i32, i32
  }
  func.func @transform_5(%arg0: i32) -> (i32, i32, i32) {
    %c0_i32 = arith.constant 0 : i32
    %c0_i32_0 = arith.constant 0 : i32
    %c0_i32_1 = arith.constant 0 : i32
    return %arg0, %c0_i32, %c0_i32_0 : i32, i32, i32
  }
  func.func @transform_6(%arg0: i32) -> (i32, i32, i32) {
    %c0_i32 = arith.constant 0 : i32
    %c0_i32_0 = arith.constant 0 : i32
    %c0_i32_1 = arith.constant 0 : i32
    return %arg0, %c0_i32, %c0_i32_0 : i32, i32, i32
  }
  func.func @transform_7(%arg0: i32) -> (i32, i32, i32) {
    %c0_i32 = arith.constant 0 : i32
    %c0_i32_0 = arith.constant 0 : i32
    %c0_i32_1 = arith.constant 0 : i32
    return %arg0, %c0_i32, %c0_i32_0 : i32, i32, i32
  }
  func.func @transform_8(%arg0: i32) -> (i32, i32, i32) {
    %c0_i32 = arith.constant 0 : i32
    %c0_i32_0 = arith.constant 0 : i32
    %c0_i32_1 = arith.constant 0 : i32
    return %arg0, %c0_i32, %c0_i32_0 : i32, i32, i32
  }
  func.func @transform_9(%arg0: i32) -> (i32, i32, i32) {
    %c0_i32 = arith.constant 0 : i32
    %c0_i32_0 = arith.constant 0 : i32
    %c0_i32_1 = arith.constant 0 : i32
    return %arg0, %c0_i32, %c0_i32_0 : i32, i32, i32
  }
  func.func @transform_10(%arg0: i32) -> (i32, i32, i32) {
    %c0_i32 = arith.constant 0 : i32
    %c0_i32_0 = arith.constant 0 : i32
    %c0_i32_1 = arith.constant 0 : i32
    return %arg0, %c0_i32, %c0_i32_0 : i32, i32, i32
  }
  func.func @transform_11(%arg0: i32) -> (i32, i32, i32) {
    %c0_i32 = arith.constant 0 : i32
    %c0_i32_0 = arith.constant 0 : i32
    %c0_i32_1 = arith.constant 0 : i32
    return %arg0, %c0_i32, %c0_i32_0 : i32, i32, i32
  }
  func.func @transform_12(%arg0: i32) -> (i32, i32, i32) {
    %c0_i32 = arith.constant 0 : i32
    %c0_i32_0 = arith.constant 0 : i32
    %c0_i32_1 = arith.constant 0 : i32
    return %arg0, %c0_i32, %c0_i32_0 : i32, i32, i32
  }
  func.func @transform_13(%arg0: i32) -> (i32, i32, i32) {
    %c0_i32 = arith.constant 0 : i32
    %c0_i32_0 = arith.constant 0 : i32
    %c0_i32_1 = arith.constant 0 : i32
    return %arg0, %c0_i32, %c0_i32_0 : i32, i32, i32
  }
  func.func @transform_14(%arg0: i32) -> (i32, i32, i32) {
    %c0_i32 = arith.constant 0 : i32
    %c0_i32_0 = arith.constant 0 : i32
    %c0_i32_1 = arith.constant 0 : i32
    return %arg0, %c0_i32, %c0_i32_0 : i32, i32, i32
  }
  func.func @transform_15(%arg0: i32) -> (i32, i32, i32) {
    %c0_i32 = arith.constant 0 : i32
    %c0_i32_0 = arith.constant 0 : i32
    %c0_i32_1 = arith.constant 0 : i32
    return %arg0, %c0_i32, %c0_i32_0 : i32, i32, i32
  }
  func.func @transform_16(%arg0: i32) -> (i32, i32) {
    %c0_i32 = arith.constant 0 : i32
    %c0_i32_0 = arith.constant 0 : i32
    %c0_i32_1 = arith.constant 0 : i32
    return %c0_i32, %c0_i32_0 : i32, i32
  }
  func.func @transform_17(%arg0: i32) -> (i32, i32) {
    %c0_i32 = arith.constant 0 : i32
    %c0_i32_0 = arith.constant 0 : i32
    %c0_i32_1 = arith.constant 0 : i32
    return %c0_i32, %c0_i32_0 : i32, i32
  }
  func.func @transform_18(%arg0: i32) -> (i32, i32) {
    %c0_i32 = arith.constant 0 : i32
    %c0_i32_0 = arith.constant 0 : i32
    %c0_i32_1 = arith.constant 0 : i32
    return %c0_i32, %c0_i32_0 : i32, i32
  }
}

</mosaic_0001>

<bundles_post_ra>
// kernel: tile.29
= control target key start
LH: loop header
LB: loop body
LE: loop exit
PB: predicated region body
PF: predicated region fallthrough
CT: control target
= control target key end

     0   :  { %vm42_vm0 = vcmask 1047556   ;;  %vm44_vm1 = vcmask 130048   ;;  %vm54_vm2 = vcmask 261248   ;;  %s111_s0 = inlined_call_operand.vmem [shape: f32[8,2,16], index: 0, kind: input, shape index: {}]   ;;  %s112_s1 = inlined_call_operand.vmem [shape: f32[8,32], index: 1, kind: output, shape index: {}]  }
   0x1   :  { %v62_v0 = vld [vmem:[%s111_s0 + $0xe] sm:$0x3]  ;;  %v63_v1 = vld [vmem:[%s111_s0 + $0xc] sm:$0x3]  ;;  %v64_v2 = vld [vmem:[%s111_s0 + $0xa] sm:$0x3] }
   0x2   :  { %8 = vst [vmem:[#allocation0 + $0x38] sm:$0x3] %v62_v0  ;;  %13 = vst [vmem:[#allocation0 + $0x30] sm:$0x3] %v63_v1  ;;  %v65_v3 = vld [vmem:[%s111_s0 + $0x8] sm:$0x3] }
   0x3   :  { %18 = vst [vmem:[#allocation0 + $0x28] sm:$0x3] %v64_v2  ;;  %v66_v4 = vld [vmem:[%s111_s0 + $0x6] sm:$0x3]  ;;  %v67_v5 = vld [vmem:[%s111_s0 + $0x4] sm:$0x3] }
   0x4   :  { %23 = vst [vmem:[#allocation0 + $0x20] sm:$0x3] %v65_v3  ;;  %28 = vst [vmem:[#allocation0 + $0x18] sm:$0x3] %v66_v4  ;;  %v68_v6 = vld [vmem:[%s111_s0 + $0x2] sm:$0x3] }
   0x5   :  { %33 = vst [vmem:[#allocation0 + $0x10] sm:$0x3] %v67_v5  ;;  %v38_v7 = vld [vmem:[%s111_s0] sm:$0x3]  ;;  %37 = vst [vmem:[#allocation0 + $0x8] sm:$0x3] %v68_v6 }
   0x6   :  { %39 = vst [vmem:[#allocation0] sm:$0x3] %v38_v7  ;;  %s70_s0 = smov 16  }
   0xb   :  { %v41_v8 = vld [vmem:[#allocation0] ss:$8 sm:$0xf0]   ;;  %v49_v9 = vld [vmem:[#allocation0 + $0x1] ss:$8 sm:$0xf0]  }
   0xd   :  { %v40_v10 = vld [vmem:[#allocation0] ss:$8 sm:$0xf]   ;;  %v47_v11 = vld [vmem:[#allocation0 + $0x1] ss:$8 sm:$0xf]  }
   0xe   :  { %v43_v12 = vsel %vm42_vm0, %v41_v8, %v40_v10  ;;  %v51_v13 = vsel %vm42_vm0, %v49_v9, %v47_v11 }
   0xf   :  { %52 = vrot.lane.b32.xlu0 %v51_v13, %s70_s0  ;;  %45 = vst.msk [vmem:[%s112_s1] sm:$0xff] %vm44_vm1, %v43_v12  }
  0x81   :  { %v53_v14 = vpop.permute.xlu0 %52  }
  0x82   :  { %55 = vst.msk [vmem:[%s112_s1] sm:$0xff] %vm54_vm2, %v53_v14  }

// kernel: tile.34
= control target key start
LH: loop header
LB: loop body
LE: loop exit
PB: predicated region body
PF: predicated region fallthrough
CT: control target
= control target key end

     0   :  { %vm42_vm0 = vcmask 1047556   ;;  %vm44_vm1 = vcmask 130048   ;;  %s93_s22 = smov 16   ;;  %s94_s25 = smov 32   ;;  %vm54_vm2 = vcmask 523648   ;;  %vm64_vm3 = vcmask 392448   ;;  %s146_s0 = inlined_call_operand.vmem [shape: f32[8,4,16], index: 0, kind: input, shape index: {}]   ;;  %s147_s1 = inlined_call_operand.vmem [shape: f32[8,64], index: 1, kind: output, shape index: {}]  }
   0x1   :  { %v82_v0 = vld [vmem:[%s146_s0 + $0x1c] sm:$0xf]  ;;  %v83_v1 = vld [vmem:[%s146_s0 + $0x18] sm:$0xf]  ;;  %v84_v2 = vld [vmem:[%s146_s0 + $0x14] sm:$0xf] }
   0x2   :  { %8 = vst [vmem:[#allocation0 + $0x38] sm:$0xf] %v82_v0  ;;  %13 = vst [vmem:[#allocation0 + $0x30] sm:$0xf] %v83_v1  ;;  %v85_v3 = vld [vmem:[%s146_s0 + $0x10] sm:$0xf] }
   0x3   :  { %18 = vst [vmem:[#allocation0 + $0x28] sm:$0xf] %v84_v2  ;;  %v86_v4 = vld [vmem:[%s146_s0 + $0xc] sm:$0xf]  ;;  %v87_v5 = vld [vmem:[%s146_s0 + $0x8] sm:$0xf] }
   0x4   :  { %23 = vst [vmem:[#allocation0 + $0x20] sm:$0xf] %v85_v3  ;;  %28 = vst [vmem:[#allocation0 + $0x18] sm:$0xf] %v86_v4  ;;  %v88_v6 = vld [vmem:[%s146_s0 + $0x4] sm:$0xf] }
   0x5   :  { %33 = vst [vmem:[#allocation0 + $0x10] sm:$0xf] %v87_v5  ;;  %v38_v7 = vld [vmem:[%s146_s0] sm:$0xf]  ;;  %37 = vst [vmem:[#allocation0 + $0x8] sm:$0xf] %v88_v6 }
   0x6   :  { %39 = vst [vmem:[#allocation0] sm:$0xf] %v38_v7  ;;  %s92_s0 = smov 48   ;;  %vm74_vm4 = vcmask 261248  }
   0xb   :  { %v49_v8 = vld [vmem:[#allocation0 + $0x3] ss:$8 sm:$0xf0]   ;;  %v59_v9 = vld [vmem:[#allocation0 + $0x2] ss:$8 sm:$0xf0]  }
   0xc   :  { %v69_v14 = vld [vmem:[#allocation0 + $0x1] ss:$8 sm:$0xf0]   ;;  %v41_v17 = vld [vmem:[#allocation0] ss:$8 sm:$0xf0]  }
   0xd   :  { %v47_v10 = vld [vmem:[#allocation0 + $0x3] ss:$8 sm:$0xf]   ;;  %v57_v11 = vld [vmem:[#allocation0 + $0x2] ss:$8 sm:$0xf]  }
   0xe   :  { %v51_v12 = vsel %vm42_vm0, %v49_v8, %v47_v10  ;;  %v67_v13 = vld [vmem:[#allocation0 + $0x1] ss:$8 sm:$0xf]   ;;  %v40_v16 = vld [vmem:[#allocation0] ss:$8 sm:$0xf]   ;;  %v61_v18 = vsel %vm42_vm0, %v59_v9, %v57_v11 }
   0xf   :  { %52 = vrot.lane.b32.xlu0 %v51_v12, %s92_s0  ;;  %v71_v15 = vsel %vm42_vm0, %v69_v14, %v67_v13  ;;  %v43_v19 = vsel %vm42_vm0, %v41_v17, %v40_v16 }
  0x10   :  { %72 = vrot.lane.b32.xlu1 %v71_v15, %s93_s22  ;;  %45 = vst.msk [vmem:[%s147_s1] sm:$0xff] %vm44_vm1, %v43_v19  }
  0x13   :  { %62 = vrot.lane.b32.xlu0 %v61_v18, %s94_s25 }
  0x81   :  { %v53_v20 = vpop.permute.xlu0 %52  }
  0x82   :  { %55 = vst.msk [vmem:[%s147_s1] sm:$0xff] %vm54_vm2, %v53_v20   ;;  %v73_v21 = vpop.permute.xlu1 %72  }
  0x85   :  { %v63_v22 = vpop.permute.xlu0 %62  }
  0x86   :  { %65 = vst.msk [vmem:[%s147_s1] sm:$0xff] %vm64_vm3, %v63_v22  }
  0x87   :  { %75 = vst.msk [vmem:[%s147_s1] sm:$0xff] %vm74_vm4, %v73_v21  }

// kernel: phimoe_forward.1
= control target key start
LH: loop header
LB: loop body
LE: loop exit
PB: predicated region body
PF: predicated region fallthrough
CT: control target
= control target key end

     0   :  { %s4007_s0 = inlined_call_operand.vmem [shape: f32[8,64], index: 0, kind: input, shape index: {}]   ;;  %s4008_s1 = inlined_call_operand.vmem [shape: f32[8,128], index: 1, kind: input, shape index: {}]   ;;  %s4009_s2 = inlined_call_operand.vmem [shape: f32[8,128], index: 2, kind: input, shape index: {}]   ;;  %s4010_s3 = inlined_call_operand.vmem [shape: f32[8,8], index: 3, kind: input, shape index: {}]   ;;  %s4011_s4 = inlined_call_operand.vmem [shape: f32[4,512], index: 4, kind: input, shape index: {}]   ;;  %s4012_s5 = inlined_call_operand.vmem [shape: f32[2,1,64], index: 5, kind: input, shape index: {}]   ;;  %s4013_s6 = inlined_call_operand.vmem [shape: f32[2,1,64], index: 6, kind: input, shape index: {}]   ;;  %s4014_s7 = inlined_call_operand.vmem [shape: bf16[2,64,256], index: 7, kind: input, shape index: {}]   ;;  %s4015_s8 = inlined_call_operand.vmem [shape: f32[2,1,256], index: 8, kind: input, shape index: {}]   ;;  %s4016_s9 = inlined_call_operand.vmem [shape: bf16[2,64,64], index: 9, kind: input, shape index: {}]   ;;  %s4017_s10 = inlined_call_operand.vmem [shape: f32[2,1,64], index: 10, kind: input, shape index: {}]   ;;  %s4018_s11 = inlined_call_operand.vmem [shape: f32[2,1,64], index: 11, kind: input, shape index: {}]   ;;  %s4019_s12 = inlined_call_operand.vmem [shape: f32[2,1,64], index: 12, kind: input, shape index: {}]   ;;  %s4020_s13 = inlined_call_operand.vmem [shape: bf16[2,64,4], index: 13, kind: input, shape index: {}]   ;;  %s4021_s14 = inlined_call_operand.vmem [shape: bf16[2,64,1024], index: 14, kind: input, shape index: {}]   ;;  %s4022_s15 = inlined_call_operand.vmem [shape: bf16[2,512,64], index: 15, kind: input, shape index: {}]   ;;  %s4023_s16 = inlined_call_operand.vmem [shape: f32[1,64], index: 16, kind: input, shape index: {}]   ;;  %s4024_s17 = inlined_call_operand.vmem [shape: f32[1,64], index: 17, kind: input, shape index: {}]   ;;  %s4025_s18 = inlined_call_operand.hbm [shape: f32[8,64], index: 18, kind: output, shape index: {}]  }
   0x1   :  { %4029 = sst [smem:[#allocation6_spill]] %s4007_s0 }
   0x2   :  { %4030 = sst [smem:[#allocation7_spill]] %s4008_s1 }
   0x3   :  { %4031 = sst [smem:[#allocation8_spill]] %s4009_s2 }
   0x4   :  { %4032 = sst [smem:[#allocation9_spill]] %s4011_s4 }
   0x5   :  { %4033 = sst [smem:[#allocation10_spill]] %s4014_s7 }
   0x6   :  { %4034 = sst [smem:[#allocation11_spill]] %s4015_s8 }
   0x7   :  { %4035 = sst [smem:[#allocation12_spill]] %s4023_s16 }
   0x8   :  { %4036 = sst [smem:[#allocation13_spill]] %s4024_s17 }
   0x9   :  { %4037 = sst [smem:[#allocation14_spill]] %s4025_s18 }
   0xa   :  { %23 = vsyncpa [#allocation3], 0  ;;  %s3596_s27 = smov 0  }
   0xb LB: > { %4038 = sst [smem:[#allocation5_spill]] %s3488_s27  ;;  %s3602_s28 = sadd.s32 4294967295, %s3488_s27   ;;  %s3488_s27 = sphi %s3596_s27, %s29_s27  }
   0xc   : > { %p3032_p0 = scmp.ge.s32.totalorder %s3488_s27, 1  ;;  %p597_p1 = scmp.lt.s32.totalorder %s3488_s27, 3 }
   0xe   : > { %p598_p2 = pnand %p3032_p0, %p597_p1 }
   0xf   : > { %p685_p3 = scmp.lt.s32.totalorder (!%p598_p2), %s3602_s28, 1  ;;  %s4039_s7 = sld [smem:[#allocation10_spill]] (!%p598_p2) }
  0x10   : > { %601 = sbr.rel (%p598_p2) target bundleno = 5847 (0x16d7), region = 92  ;;  %s4040_s8 = sld [smem:[#allocation11_spill]] (!%p598_p2) }
  0x11   : > { %p3044_p4 = scmp.ne.s32.totalorder (!%p598_p2), %s3602_s28, 0 }
  0x17   : > { %s3608_s29 = scalar_select %p685_p3, %s3602_s28, 1 }
  0x18   : > { %733 = sbr.rel (%p3044_p4) target bundleno = 32 (0x20), region = 96  ;;  %s4041_s24 = sld [smem:[#allocation6_spill]] (!%p3044_p4)  ;;  %vm735_vm0 = vcmask (!%p3044_p4), 523264  }
  0x19   : > { %s3169_s22 = sshll.u32 %s3608_s29, 6  ;;  %s3035_s2 = sshll.u32 %s3608_s29, 1 }
  0x1a   : > { %s3623_s25 = scalar_lea.vmem %s4039_s7, %s3169_s22  ;;  %s3628_s0 = scalar_lea.vmem %s4040_s8, %s3035_s2 }
  0x1b   : > { %s3170_s27 = sshll.u32 %s3608_s29, 5  ;;  %s710_s22 = scalar_lea.vmem %s4018_s11, %s3608_s29 }
  0x1c   : > { %s3638_s20 = scalar_lea.vmem %s4016_s9, %s3170_s27  ;;  %s713_s26 = scalar_lea.vmem %s4019_s12, %s3608_s29 }
  0x1d   : > { %s3651_s7 = scalar_lea.vmem %s4020_s13, %s3170_s27  ;;  %s3172_s17 = sshll.u32 %s3608_s29, 8 }
  0x1e   : > { %s3657_s16 = scalar_lea.vmem %s4021_s14, %s3172_s17  ;;  %s3662_s4 = scalar_lea.vmem %s4022_s15, %s3172_s17  ;;  %v734_v0 = vld [vmem:[%s4041_s24] sm:$0xff] (!%p3044_p4) }
  0x1f   : > { %736 = vst.msk [vmem:[#allocation2] sm:$0xff] %vm735_vm0, %v734_v0 }
  0x20 PF: > { %vm741_vm1 = vcmask 523264   ;;  %v3348_v8 = vld [vmem:[%s3623_s25 + $0x4] ss:$8 sps:$4 sm:$0xff]   ;;  %v3350_v9 = vld [vmem:[%s3623_s25] ss:$8 sps:$4 sm:$0xff]   ;;  %v3490_v12 = vmov 0   ;;  %s4042_s19 = scalar_lea.vmem %s4012_s5, %s3608_s29  ;;  %s4043_s17 = scalar_lea.vmem %s4013_s6, %s3608_s29  ;;  %v781_v28 = vlaneseq }
  0x21   : > { %v3351_v10 = vld [vmem:[%s3623_s25 + $0x14] ss:$8 sps:$4 sm:$0xff]   ;;  %834 = vmatprep.subr.bf16.mxu0 %v3348_v8  ;;  %v3353_v11 = vld [vmem:[%s3623_s25 + $0x10] ss:$8 sps:$4 sm:$0xff]   ;;  %866 = vmatprep.mubr.bf16.mxu0 %v3490_v12  ;;  %v3354_v13 = vld [vmem:[%s3623_s25 + $0x24] ss:$8 sps:$4 sm:$0xff]   ;;  %s4046_s21 = scalar_lea.vmem %s4017_s10, %s3608_s29 }
  0x22   : > { %835 = vmatpush1.bf16.msra.mxu0 %v3350_v9  ;;  %v3356_v14 = vld [vmem:[%s3623_s25 + $0x20] ss:$8 sps:$4 sm:$0xff]   ;;  %v3357_v15 = vld [vmem:[%s3623_s25 + $0x34] ss:$8 sps:$4 sm:$0xff]   ;;  %v3359_v16 = vld [vmem:[%s3623_s25 + $0x30] ss:$8 sps:$4 sm:$0xff]  }
  0x23   : > { %836 = vmatprep.subr.bf16.mxu0 %v3351_v10  ;;  %v3045_v21 = vld [vmem:[%s4042_s19] ss:$0 sm:$0xff]  ;;  %v3491_v27 = vmov 0.0   ;;  %v782_v29 = vshrl.u32 %v781_v28, 7  ;;  %vm3492_vm2 = vmmov 0   ;;  %s4044_s1 = sld [smem:[#allocation7_spill]] }
  0x24   : > { %v3046_v23 = vld [vmem:[%s4043_s17] ss:$0 sm:$0xff]  ;;  %3247 = vmatprep.subr.mxu1 %v3491_v27  ;;  %3249 = vmatprep.mubr.msk.f32.mxu1 %vm3492_vm2, %v3491_v27  ;;  %s3493_s24 = smov 32   ;;  %s3494_s8 = smov 64   ;;  %vm883_vm3 = vcmask 130048   ;;  %vm960_vm4 = vcmask 64512  }
  0x25   : > { %v783_v30 = vsub.s32 0, %v782_v29  ;;  %v779_v31 = vld [vmem:[%s3628_s0] sm:$0x3]  ;;  %v787_v32 = vsub.s32 1, %v782_v29  ;;  %s4045_s0 = sld [smem:[#allocation8_spill]]  ;;  %s3495_s2 = smov 112  }
  0x26   : > { %v3668_v1 = vld [vmem:[#allocation2] sm:$0xff]  ;;  %837 = vmatpush1.bf16.msra.mxu0 %v3353_v11  ;;  %s3496_s30 = smov 16   ;;  %s3497_s17 = smov 48   ;;  %vm1861_vm5 = vcmask 31744   ;;  %vm2348_vm13 = vcmask 1043456  }
  0x27   : > { %v742_v2 = vsel %vm741_vm1, %v3668_v1, 0.0  ;;  %838 = vmatprep.subr.bf16.mxu0 %v3354_v13  ;;  %v784_v33 = vrot.slane %v779_v31, %v783_v30  ;;  %v788_v34 = vrot.slane %v779_v31, %v787_v32  ;;  %v3722_v49 = vld [vmem:[%s4010_s3] sm:$0xff]  ;;  %s3498_s25 = smov 96   ;;  %s3499_s18 = smov 80  }
  0x28   : > { %743 = vadd.xlane.f32.xlu0 %v742_v2  ;;  %v3360_v63 = vld [vmem:[%s3638_s20] sm:$0xff]   ;;  %p3162_p5 = scmp.ne.s32.totalorder %s3602_s28, 1 }
  0x29   : > { %v875_v36 = vld [vmem:[%s4044_s1] sm:$0xff]  ;;  %s4048_s19 = sld [smem:[#allocation12_spill]] (!%p3162_p5) }
  0x2a   : > { %839 = vmatpush1.bf16.msra.mxu0 %v3356_v14 }
  0x2b   : > { %840 = vmatprep.subr.bf16.mxu0 %v3357_v15  ;;  %v877_v39 = vld [vmem:[%s4045_s0] sm:$0xff] }
  0x2e   : > { %841 = vmatpush1.bf16.msra.mxu0 %v3359_v16 }
  0x2f   : > { %3273 = vmatprep.subr.bf16.mxu0 %v3491_v27 }
  0xb5   : > { %v744_v3 = vpop.xlane.xlu0 %743 }
  0xb6   : > { %v746_v4 = vmul.f32 0.015625, %v744_v3 }
  0xb8   : > { %v747_v5 = vsub.f32 %v3668_v1, %v746_v4 }
  0xba   : > { %v748_v6 = vmul.f32 %v747_v5, %v747_v5 }
  0xbc   : > { %v749_v7 = vsel %vm741_vm1, %v748_v6, 0.0 }
  0xbd   : > { %750 = vadd.xlane.f32.xlu0 %v749_v7 }
 0x14a   : > { %v751_v17 = vpop.xlane.xlu0 %750 }
 0x14b   : > { %v752_v18 = vmul.f32 0.015625, %v751_v17 }
 0x14d   : > { %v753_v19 = vadd.f32 1e-05, %v752_v18 }
 0x14f   : > { %3402 = vrsqrt.f32 %v753_v19 }
 0x159   : > { %v3403_v20 = vpop.eup %3402 }
 0x15a   : > { %v755_v22 = vmul.f32 %v3403_v20, %v747_v5 }
 0x15c   : > { %v762_v24 = vmul.f32 %v3045_v21, %v755_v22  ;;  %v3361_v22 = vld [vmem:[%s3638_s20 + $0x8] sm:$0xff]  }
 0x15e   : > { %v769_v25 = vadd.f32 %v3046_v23, %v762_v24 }
 0x160   : > { %v770_v26 = vpack.c.bf16 %v769_v25, %v769_v25 }
 0x162   : > { %3055 = vmatmul.mubr.msk.bf16.vlgmr.msra.gmra.mrb[0].mxu0 %vm741_vm1, %v770_v26 }
 0x163   : > { %3275 = vmatprep.mubr.msk.bf16.mxu0 %vm3492_vm2, %v3491_v27  ;;  %3274 = vmatpush3.bf16.msra.mxu0 %v3360_v63 }
 0x164   : > { %3284 = vmatprep.subr.mxu0 %v3491_v27 }
 0x235   : > { %v868_v35 = vpop.f32.mrb[0].mxu0 }
 0x236   : > { %v869_v37 = vadd.f32 %v868_v35, %v784_v33  ;;  %v870_v38 = vpop.f32.mrb[1].mxu0 }
 0x237   : > { %v871_v40 = vadd.f32 %v870_v38, %v788_v34  ;;  %v872_v41 = vpop.f32.mrb[2].mxu0 }
 0x238   : > { %v876_v42 = vmul.f32 %v875_v36, %v869_v37  ;;  %v873_v43 = vpop.f32.mrb[3].mxu0 }
 0x239   : > { %v878_v44 = vmul.f32 %v877_v39, %v871_v40 }
 0x23b   : > { %v3708_v45 = vadd.f32 %v878_v44, %v876_v42 }
 0x23d   : > { %972 = vrot.lane.b32.xlu0 %v3708_v45, %s3493_s24  ;;  %881 = vrot.lane.b32.xlu1 %v3708_v45, %s3494_s8 }
 0x2af   : > { %v882_v46 = vpop.permute.xlu1 %881  ;;  %v973_v47 = vpop.permute.xlu0 %972 }
 0x2b0   : > { %3248 = vmatpush3.xpose.msk.msra.mxu1 %vm883_vm3, %v882_v46 }
 0x2b1   : > { %3252 = vmatprep.subr.mxu1 %v3491_v27 }
 0x2b3   : > { %3250 = vmatmul.mubr.msk.f32.vlgmr.msra.gmra.mrb[0].mxu1 %vm883_vm3, %v3708_v45 }
 0x2b4   : > { %3253 = vmatpush3.msra.mxu1 %v973_v47  ;;  %3254 = vmatprep.mubr.msk.f32.mxu1 %vm3492_vm2, %v3491_v27 }
 0x2b5   : > { %3257 = vmatprep.subr.mxu1 %v3491_v27 }
 0x386   : > { %v954_v48 = vpop.f32.mrb[0].mxu1 }
 0x387   : > { %v958_v50 = vmul.f32 0.25, %v954_v48  ;;  %v3251_v51 = vpop.f32.mrb[1].mxu1 }
 0x389   : > { %v959_v52 = vadd.f32 %v958_v50, %v3722_v49 }
 0x38b   : > { %v961_v53 = vsel %vm960_vm4, %v959_v52, -inf }
 0x38c   : > { %962 = vmax.xlane.f32.xlu1 %v961_v53 }
 0x419   : > { %v963_v54 = vpop.xlane.xlu1 %962 }
 0x41a   : > { %v964_v55 = vsub.f32 %v959_v52, %v963_v54 }
 0x41c   : > { %v965_v56 = vmul.f32 1.442695, %v964_v55 }
 0x41e   : > { %3404 = vpow2.f32 %v965_v56 }
 0x428   : > { %v3405_v57 = vpop.eup %3404 }
 0x429   : > { %v967_v58 = vsel %vm960_vm4, %v3405_v57, 0.0 }
 0x42a   : > { %968 = vadd.xlane.f32.xlu0 %v967_v58 }
 0x440   : > { %1051 = vrot.lane.b32.xlu0 %v3708_v45, %s3495_s2 }
 0x4b7   : > { %v969_v59 = vpop.xlane.xlu0 %968 }
 0x4b8   : > { %3406 = vrcp.f32 %v969_v59 }
 0x4bb   : > { %v1052_v62 = vpop.permute.xlu0 %1051 }
 0x4c2   : > { %v3407_v60 = vpop.eup %3406 }
 0x4c3   : > { %v971_v61 = vmul.f32 %v3407_v60, %v3405_v57 }
 0x4c5   : > { %3255 = vmatmul.mubr.msk.f32.vlgmr.msra.gmra.mrb[2].mxu1 %vm960_vm4, %v971_v61 }
 0x4c6   : > { %3258 = vmatpush3.xpose.msk.msra.mxu1 %vm883_vm3, %v882_v46  ;;  %3259 = vmatprep.mubr.msk.f32.mxu1 %vm3492_vm2, %v3491_v27 }
 0x4c7   : > { %3262 = vmatprep.subr.mxu1 %v3491_v27 }
 0x4c9   : > { %3260 = vmatmul.mubr.msk.f32.vlgmr.msra.gmra.mrb[4].mxu1 %vm883_vm3, %v1052_v62 }
 0x4ca   : > { %3263 = vmatpush3.msra.mxu1 %v973_v47  ;;  %3264 = vmatprep.mubr.msk.f32.mxu1 %vm3492_vm2, %v3491_v27 }
 0x4cb   : > { %3267 = vmatprep.subr.bf16.mxu1 %v3491_v27 }
 0x598   : > { %v1044_v0 = vpop.f32.mrb[2].mxu1 }
 0x599   : > { %v1048_v2 = vpack.c.bf16 %v1044_v0, %v1044_v0  ;;  %v3256_v3 = vpop.f32.mrb[3].mxu1 }
 0x59b   : > { %3276 = vmatmul.mubr.msk.bf16.vlgmr.msra.gmra.mrb[4].mxu0 %vm883_vm3, %v1048_v2  ;;  %v3363_v2 = vld [vmem:[%s3638_s20 + $0x18] sm:$0xff]  }
 0x59c   : > { %v1121_v4 = vpop.f32.mrb[4].mxu1  ;;  %3286 = vmatprep.mubr.msk.f32.mxu0 %vm3492_vm2, %v3491_v27 }
 0x59d   : > { %v1125_v5 = vmul.f32 0.25, %v1121_v4  ;;  %v3261_v6 = vpop.f32.mrb[5].mxu1 }
 0x59f   : > { %v1126_v7 = vadd.f32 %v1125_v5, %v3722_v49 }
 0x5a1   : > { %v1127_v8 = vsel %vm960_vm4, %v1126_v7, -inf }
 0x5a2   : > { %1128 = vmax.xlane.f32.xlu0 %v1127_v8 }
 0x5b8   : > { %1403 = vrot.lane.b32.xlu0 %v3708_v45, %s3496_s30 }
 0x62f   : > { %v1129_v9 = vpop.xlane.xlu0 %1128 }
 0x630   : > { %v1130_v10 = vsub.f32 %v1126_v7, %v1129_v9 }
 0x632   : > { %v1131_v11 = vmul.f32 1.442695, %v1130_v10 }
 0x633   : > { %v3745_v13 = vpop.permute.xlu0 %1403 }
 0x634   : > { %3408 = vpow2.f32 %v1131_v11  ;;  %3285 = vmatpush3.msra.mxu0 %v3745_v13 }
 0x635   : > { %3295 = vmatprep.subr.mxu0 %v3491_v27 }
 0x63e   : > { %v3409_v14 = vpop.eup %3408 }
 0x63f   : > { %v1133_v15 = vsel %vm960_vm4, %v3409_v14, 0.0 }
 0x640   : > { %1134 = vadd.xlane.f32.xlu1 %v1133_v15  ;;  %v3076_v15 = vld [vmem:[%s4046_s21] ss:$0 sm:$0xff] }
 0x651   : > { %1314 = vrot.lane.b32.xlu1 %v3708_v45, %s3497_s17  ;;  %s4049_s17 = sld [smem:[#allocation13_spill]] (!%p3162_p5) }
 0x655   : > { %1312 = vrot.lane.b32.xlu1 %v3708_v45, %s3498_s25 }
 0x66e   : > { %v1306_v16 = vpop.f32.mrb[4].mxu0 }
 0x66f   : > { %v3277_v17 = vpop.f32.mrb[5].mxu0 }
 0x670   : > { %v1309_v18 = vpop.f32.mrb[6].mxu0 }
 0x671   : > { %v3278_v19 = vpop.f32.mrb[7].mxu0 }
 0x6cd   : > { %v1135_v20 = vpop.xlane.xlu1 %1134 }
 0x6ce   : > { %3410 = vrcp.f32 %v1135_v20 }
 0x6d1   : > { %v1315_v29 = vpop.permute.xlu1 %1314 }
 0x6d5   : > { %v1313_v30 = vpop.permute.xlu1 %1312 }
 0x6d8   : > { %v3411_v21 = vpop.eup %3410 }
 0x6d9   : > { %v1137_v23 = vmul.f32 %v3411_v21, %v3409_v14 }
 0x6db   : > { %3265 = vmatmul.mubr.msk.f32.vlgmr.msra.gmra.mrb[6].mxu1 %vm960_vm4, %v1137_v23 }
 0x6dc   : > { %3268 = vmatpush3.bf16.msra.mxu1 %v3361_v22  ;;  %3269 = vmatprep.mubr.msk.bf16.mxu1 %vm3492_vm2, %v3491_v27 }
 0x6dd   : > { %3279 = vmatprep.subr.mxu1 %v3491_v27 }
 0x7ae   : > { %v1207_v24 = vpop.f32.mrb[6].mxu1 }
 0x7af   : > { %v1211_v25 = vpack.c.bf16 %v1207_v24, %v1207_v24  ;;  %v3266_v26 = vpop.f32.mrb[7].mxu1 }
 0x7b1   : > { %3270 = vmatmul.mubr.msk.bf16.vlgmr.msra.gmra.mrb[8].mxu1 %vm883_vm3, %v1211_v25 }
 0x7b2   : > { %3280 = vmatpush3.xpose.msk.msra.mxu1 %vm883_vm3, %v1315_v29  ;;  %3281 = vmatprep.mubr.msk.f32.mxu1 %vm3492_vm2, %v3491_v27 }
 0x7b3   : > { %3289 = vmatprep.subr.bf16.mxu1 %v3491_v27 }
 0x7b9   : > { %3282 = vmatmul.mubr.msk.f32.vlgmr.msra.gmra.mrb[12].mxu1 %vm883_vm3, %v1313_v30  ;;  %v1951_v30 = vld [vmem:[%s3657_s16] sm:$0xff] }
 0x7ba   : > { %3291 = vmatprep.mubr.msk.bf16.mxu1 %vm3492_vm2, %v3491_v27 }
 0x884   : > { %v1257_v31 = vpop.f32.mrb[8].mxu1 }
 0x885   : > { %v1307_v32 = vadd.f32 %v1306_v16, %v1257_v31  ;;  %v3271_v33 = vpop.f32.mrb[9].mxu1  ;;  %v1955_v31 = vld [vmem:[%s3657_s16 + $0x20] sm:$0xff] }
 0x886   : > { %v1260_v34 = vpop.f32.mrb[10].mxu1  ;;  %v3364_v33 = vld [vmem:[%s3651_s7] sm:$0xff]  }
 0x887   : > { %v3272_v35 = vpop.f32.mrb[11].mxu1  ;;  %v1959_v34 = vld [vmem:[%s3657_s16 + $0x40] sm:$0xff] }
 0x888   : > { %v1963_v35 = vld [vmem:[%s3657_s16 + $0x60] sm:$0xff] }
 0x88c   : > { %v1386_v36 = vpop.f32.mrb[12].mxu1 }
 0x88d   : > { %v1390_v37 = vmul.f32 0.25, %v1386_v36  ;;  %v3283_v38 = vpop.f32.mrb[13].mxu1  ;;  %v3093_v36 = vcombine.high %v1959_v34, %v1963_v35 }
 0x88e   : > { %v3365_v38 = vld [vmem:[%s3651_s7 + $0x8] sm:$0xff]  }
 0x88f   : > { %v1391_v39 = vadd.f32 %v1390_v37, %v3722_v49  ;;  %v3092_v37 = vcombine.low %v1959_v34, %v1963_v35  ;;  %v1962_v34 = vld [vmem:[%s3657_s16 + $0x58] sm:$0xff] }
 0x890   : > { %v1966_v35 = vld [vmem:[%s3657_s16 + $0x78] sm:$0xff] }
 0x891   : > { %v1392_v40 = vsel %vm960_vm4, %v1391_v39, -inf }
 0x892   : > { %1393 = vmax.xlane.f32.xlu1 %v1392_v40  ;;  %v1971_v40 = vld [vmem:[%s3657_s16 + $0xa0] sm:$0xff] }
 0x91f   : > { %v1394_v41 = vpop.xlane.xlu1 %1393 }
 0x920   : > { %v1395_v42 = vsub.f32 %v1391_v39, %v1394_v41  ;;  %v1967_v39 = vld [vmem:[%s3657_s16 + $0x80] sm:$0xff] }
 0x921   : > { %v3101_v41 = vcombine.high %v1967_v39, %v1971_v40 }
 0x922   : > { %v1396_v43 = vmul.f32 1.442695, %v1395_v42  ;;  %v3100_v42 = vcombine.low %v1967_v39, %v1971_v40  ;;  %v1974_v39 = vld [vmem:[%s3657_s16 + $0xb8] sm:$0xff]  ;;  %v3098_v40 = vcombine.low %v1962_v34, %v1966_v35 }
 0x924   : > { %3412 = vpow2.f32 %v1396_v43  ;;  %v3366_v43 = vld [vmem:[%s3651_s7 + $0x10] sm:$0xff]  }
 0x92e   : > { %v3413_v44 = vpop.eup %3412 }
 0x92f   : > { %v1398_v46 = vsel %vm960_vm4, %v3413_v44, 0.0 }
 0x930   : > { %1399 = vadd.xlane.f32.xlu0 %v1398_v46  ;;  %v1979_v46 = vld [vmem:[%s3657_s16 + $0xe0] sm:$0xff] }
 0x946   : > { %1532 = vrot.lane.b32.xlu0 %v3708_v45, %s3499_s18  ;;  %v3362_v45 = vld [vmem:[%s3638_s20 + $0x10] sm:$0xff]  }
 0x947   : > { %3290 = vmatpush3.bf16.msra.mxu1 %v3362_v45  ;;  %v1956_v45 = vld [vmem:[%s3657_s16 + $0x28] sm:$0xff] }
 0x948   : > { %3305 = vmatprep.subr.bf16.mxu1 %v3491_v27 }
 0x9bd   : > { %v1400_v47 = vpop.xlane.xlu0 %1399 }
 0x9be   : > { %3414 = vrcp.f32 %v1400_v47  ;;  %v3367_v47 = vld [vmem:[%s3651_s7 + $0x18] sm:$0xff]  }
 0x9c1   : > { %v1533_v51 = vpop.permute.xlu0 %1532 }
 0x9c8   : > { %v3415_v48 = vpop.eup %3414 }
 0x9c9   : > { %v1402_v50 = vmul.f32 %v3415_v48, %v3413_v44  ;;  %v1975_v44 = vld [vmem:[%s3657_s16 + $0xc0] sm:$0xff] }
 0x9ca   : > { %v3108_v48 = vcombine.low %v1975_v44, %v1979_v46 }
 0x9cb   : > { %3287 = vmatmul.mubr.msk.f32.vlgmr.msra.gmra.mrb[8].mxu0 %vm960_vm4, %v1402_v50  ;;  %v3109_v50 = vcombine.high %v1975_v44, %v1979_v46 }
 0x9cc   : > { %3296 = vmatpush3.xpose.msk.msra.mxu0 %vm883_vm3, %v1315_v29  ;;  %3297 = vmatprep.mubr.msk.f32.mxu0 %vm3492_vm2, %v3491_v27 }
 0x9cd   : > { %3300 = vmatprep.subr.mxu0 %v3491_v27 }
 0x9cf   : > { %3298 = vmatmul.mubr.msk.f32.vlgmr.msra.gmra.mrb[10].mxu0 %vm883_vm3, %v1533_v51  ;;  %v1952_v51 = vld [vmem:[%s3657_s16 + $0x8] sm:$0xff] }
 0x9d0   : > { %3301 = vmatpush3.msra.mxu0 %v3745_v13  ;;  %3302 = vmatprep.mubr.msk.f32.mxu0 %vm3492_vm2, %v3491_v27 }
 0x9d1   : > { %3311 = vmatprep.subr.bf16.mxu0 %v3491_v27 }
 0xa9e   : > { %v1475_v52 = vpop.f32.mrb[8].mxu0 }
 0xa9f   : > { %v1479_v53 = vpack.c.bf16 %v1475_v52, %v1475_v52  ;;  %v3288_v54 = vpop.f32.mrb[9].mxu0  ;;  %v1953_v52 = vld [vmem:[%s3657_s16 + $0x10] sm:$0xff] }
 0xaa0   : > { %v3087_v54 = vcombine.high %v1952_v51, %v1956_v45 }
 0xaa1   : > { %3292 = vmatmul.mubr.msk.bf16.vlgmr.msra.gmra.mrb[16].mxu1 %vm883_vm3, %v1479_v53  ;;  %v3086_v53 = vcombine.low %v1952_v51, %v1956_v45 }
 0xaa2   : > { %v1602_v55 = vpop.f32.mrb[10].mxu0  ;;  %3307 = vmatprep.mubr.msk.bf16.mxu1 %vm3492_vm2, %v3491_v27  ;;  %3306 = vmatpush3.bf16.msra.mxu1 %v3363_v2 }
 0xaa3   : > { %v1606_v56 = vmul.f32 0.25, %v1602_v55  ;;  %v3299_v57 = vpop.f32.mrb[11].mxu0  ;;  %v1957_v55 = vld [vmem:[%s3657_s16 + $0x30] sm:$0xff] }
 0xaa4   : > { %v3089_v57 = vcombine.high %v1953_v52, %v1957_v55 }
 0xaa5   : > { %v1607_v58 = vadd.f32 %v1606_v56, %v3722_v49  ;;  %v3088_v56 = vcombine.low %v1953_v52, %v1957_v55 }
 0xaa7   : > { %v1608_v59 = vsel %vm960_vm4, %v1607_v58, -inf }
 0xaa8   : > { %1609 = vmax.xlane.f32.xlu0 %v1608_v59 }
 0xb35   : > { %v1610_v60 = vpop.xlane.xlu0 %1609 }
 0xb36   : > { %v1611_v61 = vsub.f32 %v1607_v58, %v1610_v60 }
 0xb38   : > { %v1612_v62 = vmul.f32 1.442695, %v1611_v61 }
 0xb3a   : > { %3416 = vpow2.f32 %v1612_v62  ;;  %v3077_v62 = vld [vmem:[%s710_s22] ss:$0 sm:$0xff] }
 0xb44   : > { %v3417_v63 = vpop.eup %3416 }
 0xb45   : > { %v1614_v0 = vsel %vm960_vm4, %v3417_v63, 0.0 }
 0xb46   : > { %1615 = vadd.xlane.f32.xlu1 %v1614_v0  ;;  %v3078_v0 = vld [vmem:[%s713_s26] ss:$0 sm:$0xff]  ;;  %s4047_s26 = sld [smem:[#allocation9_spill]] }
 0xb74   : > { %v1525_v3 = vpop.f32.mrb[16].mxu1 }
 0xb75   : > { %v1531_v4 = vadd.f32 %v1525_v3, %v1307_v32  ;;  %v3293_v5 = vpop.f32.mrb[17].mxu1  ;;  %v3084_v32 = vcombine.low %v1951_v30, %v1955_v31  ;;  %v1960_v3 = vld [vmem:[%s3657_s16 + $0x48] sm:$0xff] }
 0xb76   : > { %v1528_v6 = vpop.f32.mrb[18].mxu1  ;;  %v1961_v5 = vld [vmem:[%s3657_s16 + $0x50] sm:$0xff] }
 0xb77   : > { %v3294_v7 = vpop.f32.mrb[19].mxu1  ;;  %v1965_v6 = vld [vmem:[%s3657_s16 + $0x70] sm:$0xff] }
 0xbd3   : > { %v1616_v49 = vpop.xlane.xlu1 %1615 }
 0xbd4   : > { %3418 = vrcp.f32 %v1616_v49 }
 0xbde   : > { %v3419_v8 = vpop.eup %3418 }
 0xbdf   : > { %v1618_v9 = vmul.f32 %v3419_v8, %v3417_v63 }
 0xbe1   : > { %3303 = vmatmul.mubr.msk.f32.vlgmr.msra.gmra.mrb[12].mxu0 %vm960_vm4, %v1618_v9  ;;  %v3097_v9 = vcombine.high %v1961_v5, %v1965_v6 }
 0xbe2   : > { %3319 = vmatprep.mubr.msk.bf16.mxu0 %vm3492_vm2, %v3491_v27  ;;  %3312 = vmatpush3.bf16.msra.mxu0 %v3364_v33 }
 0xbe3   : > { %3313 = vmatprep.subr.bf16.mxu0 %v3491_v27 }
 0xbe6   : > { %3314 = vmatpush3.bf16.msra.mxu0 %v3365_v38  ;;  %v1970_v38 = vld [vmem:[%s3657_s16 + $0x98] sm:$0xff] }
 0xbe7   : > { %3315 = vmatprep.subr.bf16.mxu0 %v3491_v27  ;;  %v3106_v44 = vcombine.low %v1970_v38, %v1974_v39 }
 0xbea   : > { %3316 = vmatpush3.bf16.msra.mxu0 %v3366_v43  ;;  %v1982_v43 = vld [vmem:[%s3657_s16 + $0xf8] sm:$0xff] }
 0xbeb   : > { %3317 = vmatprep.subr.bf16.mxu0 %v3491_v27 }
 0xbee   : > { %3318 = vmatpush3.bf16.msra.mxu0 %v3367_v47 }
 0xbef   : > { %2184 = vmatprep.subr.bf16.mxu0 %v3087_v54 }
 0xcb4   : > { %v1688_v10 = vpop.f32.mrb[12].mxu0 }
 0xcb5   : > { %v1692_v11 = vpack.c.bf16 %v1688_v10, %v1688_v10  ;;  %v3304_v13 = vpop.f32.mrb[13].mxu0  ;;  %v1968_v10 = vld [vmem:[%s3657_s16 + $0x88] sm:$0xff] }
 0xcb6   : > { %v1969_v13 = vld [vmem:[%s3657_s16 + $0x90] sm:$0xff] }
 0xcb7   : > { %3308 = vmatmul.mubr.msk.bf16.vlgmr.msra.gmra.mrb[20].mxu1 %vm883_vm3, %v1692_v11  ;;  %v1972_v11 = vld [vmem:[%s3657_s16 + $0xa8] sm:$0xff] }
 0xcb8   : > { %2175 = vmatprep.mubr.bf16.mxu1 %v3490_v12 }
 0xd8a   : > { %v1738_v14 = vpop.f32.mrb[20].mxu1 }
 0xd8b   : > { %v1744_v16 = vadd.f32 %v1738_v14, %v1531_v4  ;;  %v3309_v17 = vpop.f32.mrb[21].mxu1  ;;  %v1964_v4 = vld [vmem:[%s3657_s16 + $0x68] sm:$0xff]  ;;  %v1973_v14 = vld [vmem:[%s3657_s16 + $0xb0] sm:$0xff] }
 0xd8c   : > { %v1741_v18 = vpop.f32.mrb[22].mxu1  ;;  %v3095_v8 = vcombine.high %v1960_v3, %v1964_v4  ;;  %v3103_v17 = vcombine.high %v1968_v10, %v1972_v11 }
 0xd8d   : > { %v1752_v19 = vadd.f32 %v3076_v15, %v1744_v16  ;;  %v3310_v20 = vpop.f32.mrb[23].mxu1  ;;  %v3094_v15 = vcombine.low %v1960_v3, %v1964_v4  ;;  %v3096_v16 = vcombine.low %v1961_v5, %v1965_v6  ;;  %v3105_v18 = vcombine.high %v1969_v13, %v1973_v14 }
 0xd8e   : > { %v1980_v20 = vld [vmem:[%s3657_s16 + $0xe8] sm:$0xff] }
 0xd8f   : > { %v3799_v21 = vadd.f32 %v1752_v19, %v3668_v1  ;;  %v3085_v1 = vcombine.high %v1951_v30, %v1955_v31  ;;  %v1976_v19 = vld [vmem:[%s3657_s16 + $0xc8] sm:$0xff]  ;;  %v1954_v30 = vld [vmem:[%s3657_s16 + $0x18] sm:$0xff] }
 0xd90   : > { %v1958_v31 = vld [vmem:[%s3657_s16 + $0x38] sm:$0xff] }
 0xd91   : > { %v1756_v22 = vsel %vm741_vm1, %v3799_v21, 0.0  ;;  %2143 = vmatprep.subr.bf16.mxu1 %v3085_v1  ;;  %v3110_v1 = vcombine.low %v1976_v19, %v1980_v20  ;;  %v3091_v33 = vcombine.high %v1954_v30, %v1958_v31 }
 0xd92   : > { %1757 = vadd.xlane.f32.xlu1 %v1756_v22  ;;  %2144 = vmatpush1.bf16.msra.mxu1 %v3084_v32  ;;  %v1977_v22 = vld [vmem:[%s3657_s16 + $0xd0] sm:$0xff] }
 0xd93   : > { %2145 = vmatprep.subr.bf16.mxu1 %v3093_v36  ;;  %v3090_v36 = vcombine.low %v1954_v30, %v1958_v31 }
 0xd96   : > { %2146 = vmatpush1.bf16.msra.mxu1 %v3092_v37  ;;  %v3099_v37 = vcombine.high %v1962_v34, %v1966_v35 }
 0xd97   : > { %2147 = vmatprep.subr.bf16.mxu1 %v3101_v41  ;;  %v3107_v41 = vcombine.high %v1970_v38, %v1974_v39 }
 0xd9a   : > { %2148 = vmatpush1.bf16.msra.mxu1 %v3100_v42  ;;  %v1978_v42 = vld [vmem:[%s3657_s16 + $0xd8] sm:$0xff] }
 0xd9b   : > { %2149 = vmatprep.subr.bf16.mxu1 %v3109_v50  ;;  %v3115_v46 = vcombine.high %v1978_v42, %v1982_v43  ;;  %v3114_v47 = vcombine.low %v1978_v42, %v1982_v43 }
 0xd9e   : > { %2150 = vmatpush1.bf16.msra.mxu1 %v3108_v48 }
 0xd9f   : > { %2225 = vmatprep.subr.bf16.mxu1 %v3089_v57 }
 0xe1f   : > { %v1758_v23 = vpop.xlane.xlu1 %1757 }
 0xe20   : > { %v1759_v24 = vmul.f32 0.015625, %v1758_v23  ;;  %v1981_v23 = vld [vmem:[%s3657_s16 + $0xf0] sm:$0xff] }
 0xe21   : > { %v3112_v32 = vcombine.low %v1977_v22, %v1981_v23 }
 0xe22   : > { %v1760_v25 = vsub.f32 %v3799_v21, %v1759_v24  ;;  %v3102_v24 = vcombine.low %v1968_v10, %v1972_v11 }
 0xe24   : > { %v1761_v26 = vmul.f32 %v1760_v25, %v1760_v25 }
 0xe26   : > { %v1762_v29 = vsel %vm741_vm1, %v1761_v26, 0.0  ;;  %v3111_v26 = vcombine.high %v1976_v19, %v1980_v20 }
 0xe27   : > { %1763 = vadd.xlane.f32.xlu1 %v1762_v29  ;;  %v3113_v29 = vcombine.high %v1977_v22, %v1981_v23 }
 0xeb4   : > { %v1764_v58 = vpop.xlane.xlu1 %1763 }
 0xeb5   : > { %v1765_v59 = vmul.f32 0.015625, %v1764_v58 }
 0xeb7   : > { %v1766_v60 = vadd.f32 1e-05, %v1765_v59 }
 0xeb9   : > { %3420 = vrsqrt.f32 %v1766_v60 }
 0xec3   : > { %v3421_v61 = vpop.eup %3420 }
 0xec4   : > { %v1768_v63 = vmul.f32 %v3421_v61, %v1760_v25  ;;  %v3104_v25 = vcombine.low %v1969_v13, %v1973_v14 }
 0xec6   : > { %v1775_v2 = vmul.f32 %v3077_v62, %v1768_v63 }
 0xec8   : > { %v1782_v7 = vadd.f32 %v3078_v0, %v1775_v2 }
 0xeca   : > { %v3838_v49 = vpack.c.bf16 %v1782_v7, %v1782_v7 }
 0xecc   : > { %3320 = vmatmul.mubr.msk.bf16.vlgmr.msra.gmra.mrb[16].mxu0 %vm741_vm1, %v3838_v49  ;;  %3116 = vmatmul.mubr.msk.bf16.vlgmr.msra.gmra.mrb[24].mxu1 %vm741_vm1, %v3838_v49 }
 0xecd   : > { %2185 = vmatpush1.bf16.msra.mxu0 %v3086_v53  ;;  %2226 = vmatpush1.bf16.msra.mxu1 %v3088_v56 }
 0xece   : > { %2186 = vmatprep.subr.bf16.mxu0 %v3095_v8  ;;  %2227 = vmatprep.subr.bf16.mxu1 %v3097_v9 }
 0xecf   : > { %2216 = vmatprep.mubr.bf16.mxu0 %v3490_v12  ;;  %2257 = vmatprep.mubr.bf16.mxu1 %v3490_v12 }
 0xed1   : > { %2187 = vmatpush1.bf16.msra.mxu0 %v3094_v15  ;;  %2228 = vmatpush1.bf16.msra.mxu1 %v3096_v16 }
 0xed2   : > { %2188 = vmatprep.subr.bf16.mxu0 %v3103_v17  ;;  %2229 = vmatprep.subr.bf16.mxu1 %v3105_v18 }
 0xed5   : > { %2189 = vmatpush1.bf16.msra.mxu0 %v3102_v24  ;;  %2230 = vmatpush1.bf16.msra.mxu1 %v3104_v25 }
 0xed6   : > { %2190 = vmatprep.subr.bf16.mxu0 %v3111_v26  ;;  %2231 = vmatprep.subr.bf16.mxu1 %v3113_v29 }
 0xed9   : > { %2191 = vmatpush1.bf16.msra.mxu0 %v3110_v1  ;;  %2232 = vmatpush1.bf16.msra.mxu1 %v3112_v32  ;;  %v3883_v1 = vand.u32 127, %v781_v28 }
 0xeda   : > { %2266 = vmatprep.subr.bf16.mxu0 %v3091_v33 }
 0xedc   : > { %3117 = vmatmul.mubr.msk.bf16.vlgmr.msra.gmra.mrb[20].mxu0 %vm741_vm1, %v3838_v49  ;;  %3118 = vmatmul.mubr.msk.bf16.vlgmr.msra.gmra.mrb[28].mxu1 %vm741_vm1, %v3838_v49 }
 0xedd   : > { %2267 = vmatpush1.bf16.msra.mxu0 %v3090_v36  ;;  %2298 = vmatprep.mubr.bf16.mxu0 %v3490_v12 }
 0xede   : > { %2268 = vmatprep.subr.bf16.mxu0 %v3099_v37  ;;  %2421 = vmatprep.mubr.f32.mxu1 %v3491_v27 }
 0xee1   : > { %2269 = vmatpush1.bf16.msra.mxu0 %v3098_v40 }
 0xee2   : > { %2270 = vmatprep.subr.bf16.mxu0 %v3107_v41 }
 0xee5   : > { %2271 = vmatpush1.bf16.msra.mxu0 %v3106_v44 }
 0xee6   : > { %2272 = vmatprep.subr.bf16.mxu0 %v3115_v46 }
 0xee9   : > { %2273 = vmatpush1.bf16.msra.mxu0 %v3114_v47 }
 0xeec   : > { %3119 = vmatmul.mubr.msk.bf16.vlgmr.msra.gmra.mrb[24].mxu0 %vm741_vm1, %v3838_v49 }
 0xf9f   : > { %v3870_v48 = vpop.f32.mrb[16].mxu0  ;;  %v2177_v12 = vpop.f32.mrb[24].mxu1 }
 0xfa0   : > { %v3120_v50 = vmul.f32 -1.442695, %v2177_v12  ;;  %v3321_v51 = vpop.f32.mrb[17].mxu0  ;;  %v2179_v45 = vpop.f32.mrb[25].mxu1  ;;  %v1862_v52 = vsel %vm1861_vm5, %v3870_v48, -inf }
 0xfa1   : > { %v3121_v53 = vmul.f32 -1.442695, %v2179_v45  ;;  %1863 = vmax.xlane.f32.xlu1 %v1862_v52  ;;  %v1856_v54 = vpop.f32.mrb[18].mxu0  ;;  %v2181_v55 = vpop.f32.mrb[26].mxu1  ;;  %v1883_v41 = vand.u32 2147483647, %v3870_v48 }
 0xfa2   : > { %3422 = vpow2.f32 %v3120_v50  ;;  %v3322_v56 = vpop.f32.mrb[19].mxu0  ;;  %v2182_v57 = vpop.f32.mrb[27].mxu1 }
 0xfa3   : > { %3424 = vpow2.f32 %v3121_v53 }
 0xfac   : > { %v3423_v58 = vpop.eup %3422 }
 0xfad   : > { %v3425_v59 = vpop.eup %3424  ;;  %v2319_v60 = vadd.f32 1.0, %v3423_v58 }
 0xfae   : > { %v2320_v61 = vadd.f32 1.0, %v3425_v59 }
 0xfaf   : > { %3426 = vrcp.f32 %v2319_v60  ;;  %v2218_v62 = vpop.f32.mrb[20].mxu0  ;;  %v2259_v63 = vpop.f32.mrb[28].mxu1 }
 0xfb0   : > { %3428 = vrcp.f32 %v2320_v61  ;;  %v3122_v0 = vmul.f32 -1.442695, %v2218_v62  ;;  %v2220_v2 = vpop.f32.mrb[21].mxu0  ;;  %v2261_v3 = vpop.f32.mrb[29].mxu1 }
 0xfb1   : > { %v3123_v4 = vmul.f32 -1.442695, %v2220_v2  ;;  %v2222_v5 = vpop.f32.mrb[22].mxu0  ;;  %v2263_v6 = vpop.f32.mrb[30].mxu1 }
 0xfb2   : > { %3430 = vpow2.f32 %v3122_v0  ;;  %v2223_v7 = vpop.f32.mrb[23].mxu0  ;;  %v2264_v49 = vpop.f32.mrb[31].mxu1 }
 0xfb3   : > { %3432 = vpow2.f32 %v3123_v4 }
 0xfb9   : > { %v3427_v8 = vpop.eup %3426 }
 0xfba   : > { %v3429_v9 = vpop.eup %3428  ;;  %v2331_v10 = vmul.f32 %v3427_v8, %v2177_v12 }
 0xfbb   : > { %v2332_v11 = vmul.f32 %v3429_v9, %v2179_v45 }
 0xfbc   : > { %v3431_v13 = vpop.eup %3430  ;;  %v3874_v14 = vmul.f32 %v2331_v10, %v2259_v63 }
 0xfbd   : > { %v3433_v15 = vpop.eup %3432  ;;  %v2321_v16 = vadd.f32 1.0, %v3431_v13  ;;  %v3876_v17 = vmul.f32 %v2332_v11, %v2261_v3 }
 0xfbe   : > { %v2322_v18 = vadd.f32 1.0, %v3433_v15 }
 0xfbf   : > { %3434 = vrcp.f32 %v2321_v16  ;;  %v2300_v19 = vpop.f32.mrb[24].mxu0 }
 0xfc0   : > { %3436 = vrcp.f32 %v2322_v18  ;;  %v2302_v20 = vpop.f32.mrb[25].mxu0 }
 0xfc1   : > { %v2304_v22 = vpop.f32.mrb[26].mxu0 }
 0xfc2   : > { %v2305_v23 = vpop.f32.mrb[27].mxu0 }
 0xfc9   : > { %v3435_v24 = vpop.eup %3434 }
 0xfca   : > { %v3437_v25 = vpop.eup %3436  ;;  %v2333_v26 = vmul.f32 %v3435_v24, %v2218_v62  ;;  %v2339_v24 = vld [vmem:[%s4047_s26] sm:$0xff] }
 0xfcb   : > { %v2334_v29 = vmul.f32 %v3437_v25, %v2220_v2  ;;  %v2343_v25 = vcombine.high %v2339_v24, %v2339_v24 }
 0xfcc   : > { %v3878_v30 = vmul.f32 %v2333_v26, %v2300_v19 }
 0xfcd   : > { %v3880_v31 = vmul.f32 %v2334_v29, %v2302_v20  ;;  %3124 = vmatprep.subr.msk.mxu1 %vm2348_vm13, %v2343_v25 }
 0xfce   : > { %3125 = vmatpush1.msk.msra.mxu1 %vm2348_vm13, %v2339_v24 }
0x102e   : > { %v1864_v32 = vpop.xlane.xlu1 %1863 }
0x102f   : > { %vm1865_vm6 = vcmp.ge.f32.partialorder %v3870_v48, %v1864_v32  ;;  %v1884_v28 = vmax.f32 %v1883_v41, %v1864_v32  ;;  %v1885_v44 = vsub.f32 %v1864_v32, %v3870_v48 }
0x1030   : > { %v1866_v33 = vsel %vm1865_vm6, %v3883_v1, 4 }
0x1031   : > { %v1867_v34 = vsel %vm1861_vm5, %v1866_v33, 2147483647  ;;  %3438 = vrcp.f32 %v1884_v28  ;;  %v3373_v28 = vld [vmem:[%s3662_s4 + $0xc0] sm:$0xff]  }
0x1032   : > { %v1869_v35 = vshra.s32 %v1867_v34, 16  ;;  %v1868_v37 = vand.u32 65535, %v1867_v34  ;;  %3225 = vmatprep.subr.bf16.mxu0 %v3373_v28 }
0x1034   : > { %v1871_v36 = vcvt.s32.f32 %v1869_v35  ;;  %v1870_v39 = vcvt.s32.f32 %v1868_v37 }
0x1036   : > { %1872 = vmin.xlane.f32.xlu1 %v1871_v36 }
0x103b   : > { %v3439_v43 = vpop.eup %3438 }
0x103c   : > { %v1887_v50 = vmul.f32 %v3439_v43, %v1885_v44  ;;  %v3377_v43 = vld [vmem:[%s3662_s4 + $0xc8] sm:$0xff]  }
0x103d   : > { %v3379_v44 = vld [vmem:[%s3662_s4 + $0x88] sm:$0xff]  }
0x103e   : > { %vm1888_vm9 = vcmp.gt.f32.partialorder %v1887_v50, 0.02  ;;  %v3387_v50 = vld [vmem:[%s3662_s4 + $0x98] sm:$0xff]  }
0x103f   : > { %v1889_v53 = vsel %vm1888_vm9, -inf, %v3870_v48 }
0x1040   : > { %v1890_v54 = vsel %vm1861_vm5, %v1889_v53, -inf }
0x10c3   : > { %v1873_v38 = vpop.xlane.xlu1 %1872 }
0x10c4   : > { %vm1874_vm7 = vcmp.eq.f32.partialorder %v1871_v36, %v1873_v38  ;;  %v1879_v42 = vcvt.f32.s32 %v1873_v38 }
0x10c5   : > { %v1875_v40 = vsel %vm1874_vm7, %v1870_v39, inf }
0x10c6   : > { %1876 = vmin.xlane.f32.xlu1 %v1875_v40  ;;  %v1880_v47 = vshll.u32 %v1879_v42, 16  ;;  %v2340_v40 = vld [vmem:[%s4047_s26 + $0x8] sm:$0xff]  ;;  %v3375_v42 = vld [vmem:[%s3662_s4 + $0x80] sm:$0xff]  }
0x10c7   : > { %3226 = vmatpush3.bf16.msra.mxu0 %v3375_v42 }
0x10c8   : > { %3227 = vmatprep.subr.bf16.mxu0 %v3377_v43 }
0x10cb   : > { %3228 = vmatpush3.bf16.msra.mxu0 %v3379_v44 }
0x1153   : > { %v1877_v46 = vpop.xlane.xlu1 %1876 }
0x1154   : > { %v1878_v12 = vcvt.f32.s32 %v1877_v46  ;;  %v3381_v46 = vld [vmem:[%s3662_s4 + $0xd0] sm:$0xff]  }
0x1155   : > { %3229 = vmatprep.subr.bf16.mxu0 %v3381_v46 }
0x1156   : > { %v3890_v51 = vadd.s32 %v1880_v47, %v1878_v12  ;;  %v3383_v47 = vld [vmem:[%s3662_s4 + $0x90] sm:$0xff]   ;;  %v3385_v12 = vld [vmem:[%s3662_s4 + $0xd8] sm:$0xff]  }
0x1157   : > { %3230 = vmatpush3.bf16.msra.mxu0 %v3383_v47 }
0x1158   : > { %vm1882_vm8 = vcmp.eq.s32.totalorder %v3883_v1, %v3890_v51  ;;  %3231 = vmatprep.subr.bf16.mxu0 %v3385_v12  ;;  %v3372_v51 = vld [vmem:[%s3662_s4 + $0x48] sm:$0xff]  }
0x1159   : > { %v1905_v45 = vsel %vm1882_vm8, -inf, %v3870_v48 }
0x115a   : > { %v1906_v52 = vsel %vm1861_vm5, %v1905_v45, -inf }
0x115b   : > { %1907 = vmax.xlane.f32.xlu1 %v1906_v52  ;;  %3232 = vmatpush3.bf16.msra.mxu0 %v3387_v50  ;;  %v3391_v52 = vld [vmem:[%s3662_s4 + $0xa0] sm:$0xff]  }
0x115c   : > { %v3163_v50 = vld [vmem:[%s4048_s19] ss:$0 sm:$0xff] (!%p3162_p5) }
0x115f   : > { %1891 = vmax.xlane.f32.xlu1 %v1890_v54 }
0x11e8   : > { %v1908_v55 = vpop.xlane.xlu1 %1907 }
0x11e9   : > { %vm1909_vm10 = vcmp.ge.f32.partialorder %v1905_v45, %v1908_v55  ;;  %v1927_v56 = vmax.f32 %v1883_v41, %v1908_v55  ;;  %v1928_v0 = vsub.f32 %v1908_v55, %v3870_v48  ;;  %v2344_v41 = vcombine.high %v2340_v40, %v2340_v40 }
0x11ea   : > { %v1910_v57 = vsel %vm1909_vm10, %v3883_v1, 4 }
0x11eb   : > { %3440 = vrcp.f32 %v1927_v56  ;;  %v1911_v58 = vsel %vm1861_vm5, %v1910_v57, 2147483647  ;;  %3127 = vmatprep.subr.msk.mxu1 %vm2348_vm13, %v2344_v41 }
0x11ec   : > { %v1892_v59 = vpop.xlane.xlu1 %1891  ;;  %v1913_v60 = vshra.s32 %v1911_v58, 16  ;;  %v1912_v49 = vand.u32 65535, %v1911_v58 }
0x11ed   : > { %v1893_v61 = vsub.f32 %v1889_v53, %v1892_v59  ;;  %v3393_v53 = vld [vmem:[%s3662_s4 + $0xe8] sm:$0xff]   ;;  %v3370_v59 = vld [vmem:[%s3662_s4 + $0x40] sm:$0xff]  }
0x11ee   : > { %v1915_v62 = vcvt.s32.f32 %v1913_v60  ;;  %v1914_v9 = vcvt.s32.f32 %v1912_v49  ;;  %v3371_v60 = vld [vmem:[%s3662_s4] sm:$0xff]   ;;  %v3396_v49 = vld [vmem:[%s3662_s4 + $0x78] sm:$0xff]  }
0x11ef   : > { %v1894_v63 = vmul.f32 1.442695, %v1893_v61  ;;  %v3376_v61 = vld [vmem:[%s3662_s4 + $0x50] sm:$0xff]  }
0x11f0   : > { %1916 = vmin.xlane.f32.xlu1 %v1915_v62 }
0x11f1   : > { %3442 = vpow2.f32 %v1894_v63  ;;  %v3380_v63 = vld [vmem:[%s3662_s4 + $0x58] sm:$0xff]  }
0x11f5   : > { %v3441_v2 = vpop.eup %3440 }
0x11f6   : > { %v1930_v3 = vmul.f32 %v3441_v2, %v1928_v0  ;;  %v3384_v0 = vld [vmem:[%s3662_s4 + $0x60] sm:$0xff]  }
0x11f7   : > { %v3386_v2 = vld [vmem:[%s3662_s4 + $0x20] sm:$0xff]  }
0x11f8   : > { %vm1931_vm11 = vcmp.gt.f32.partialorder %v1930_v3, 0.02  ;;  %v3388_v3 = vld [vmem:[%s3662_s4 + $0x68] sm:$0xff]  }
0x11f9   : > { %v1932_v4 = vsel %vm1931_vm11, -inf, %v1905_v45  ;;  %v3389_v45 = vld [vmem:[%s3662_s4 + $0xe0] sm:$0xff]  }
0x11fa   : > { %v1933_v5 = vsel %vm1861_vm5, %v1932_v4, -inf  ;;  %3233 = vmatprep.subr.bf16.mxu0 %v3389_v45 }
0x11fb   : > { %v3443_v6 = vpop.eup %3442  ;;  %1934 = vmax.xlane.f32.xlu0 %v1933_v5  ;;  %3234 = vmatpush3.bf16.msra.mxu0 %v3391_v52  ;;  %v3392_v5 = vld [vmem:[%s3662_s4 + $0x70] sm:$0xff]   ;;  %v3164_v52 = vld [vmem:[%s4049_s17] ss:$0 sm:$0xff] (!%p3162_p5) }
0x11fc   : > { %v1896_v7 = vsel %vm1861_vm5, %v3443_v6, 0.0  ;;  %3235 = vmatprep.subr.bf16.mxu0 %v3393_v53 }
0x11ff   : > { %1897 = vadd.xlane.f32.xlu0 %v1896_v7  ;;  %v3395_v7 = vld [vmem:[%s3662_s4 + $0xa8] sm:$0xff]  }
0x1200   : > { %3236 = vmatpush3.bf16.msra.mxu0 %v3395_v7 }
0x127d   : > { %v1917_v8 = vpop.xlane.xlu1 %1916 }
0x127e   : > { %vm1918_vm12 = vcmp.eq.f32.partialorder %v1915_v62, %v1917_v8  ;;  %v1923_v32 = vcvt.f32.s32 %v1917_v8  ;;  %v3378_v62 = vld [vmem:[%s3662_s4 + $0x10] sm:$0xff]  }
0x127f   : > { %v1919_v10 = vsel %vm1918_vm12, %v1914_v9, inf  ;;  %v3397_v8 = vld [vmem:[%s3662_s4 + $0xf0] sm:$0xff]   ;;  %v3398_v9 = vld [vmem:[%s3662_s4 + $0x38] sm:$0xff]  }
0x1280   : > { %1920 = vmin.xlane.f32.xlu0 %v1919_v10  ;;  %v1924_v34 = vshll.u32 %v1923_v32, 16  ;;  %v3399_v10 = vld [vmem:[%s3662_s4 + $0xb0] sm:$0xff]   ;;  %3237 = vmatprep.subr.bf16.mxu0 %v3397_v8 }
0x1281   : > { %3238 = vmatpush3.bf16.msra.mxu0 %v3399_v10 }
0x1288   : > { %v1935_v11 = vpop.xlane.xlu0 %1934 }
0x1289   : > { %v1936_v13 = vsub.f32 %v1932_v4, %v1935_v11  ;;  %v3390_v4 = vld [vmem:[%s3662_s4 + $0x28] sm:$0xff]   ;;  %v3400_v11 = vld [vmem:[%s3662_s4 + $0xf8] sm:$0xff]  }
0x128a   : > { %3239 = vmatprep.subr.bf16.mxu0 %v3400_v11 }
0x128b   : > { %v1937_v48 = vmul.f32 1.442695, %v1936_v13  ;;  %v3401_v13 = vld [vmem:[%s3662_s4 + $0xb8] sm:$0xff]  }
0x128c   : > { %v1898_v15 = vpop.xlane.xlu0 %1897  ;;  %3240 = vmatpush3.bf16.msra.mxu0 %v3401_v13 }
0x128d   : > { %3444 = vpow2.f32 %v1937_v48 }
0x128e   : > { %3446 = vrcp.f32 %v1898_v15 }
0x1297   : > { %v3445_v16 = vpop.eup %3444 }
0x1298   : > { %v3447_v18 = vpop.eup %3446  ;;  %v1939_v19 = vsel %vm1861_vm5, %v3445_v16, 0.0 }
0x1299   : > { %1940 = vadd.xlane.f32.xlu1 %v1939_v19  ;;  %v1900_v20 = vmul.f32 %v3447_v18, %v3443_v6  ;;  %v3394_v6 = vld [vmem:[%s3662_s4 + $0x30] sm:$0xff]  }
0x129b   : > { %v1901_v22 = vsel %vm1882_vm8, %v1900_v20, 0.0 }
0x129c   : > { %v1902_v23 = vsel %vm1861_vm5, %v1901_v22, 0.0 }
0x129d   : > { %1903 = vadd.xlane.f32.xlu1 %v1902_v23 }
0x130d   : > { %v1921_v29 = vpop.xlane.xlu0 %1920 }
0x130e   : > { %v1922_v33 = vcvt.f32.s32 %v1921_v29 }
0x1310   : > { %v1925_v35 = vadd.s32 %v1924_v34, %v1922_v33 }
0x1312   : > { %vm1926_vm14 = vcmp.eq.s32.totalorder %v3883_v1, %v1925_v35  ;;  %v3374_v1 = vld [vmem:[%s3662_s4 + $0x8] sm:$0xff]  }
0x1326   : > { %v1941_v26 = vpop.xlane.xlu1 %1940 }
0x1327   : > { %3448 = vrcp.f32 %v1941_v26 }
0x132a   : > { %v1904_v54 = vpop.xlane.xlu1 %1903 }
0x132b   : > { %v1948_v56 = vsel %vm1882_vm8, %v1904_v54, 0.0 }
0x1331   : > { %v3449_v36 = vpop.eup %3448 }
0x1332   : > { %v1943_v37 = vmul.f32 %v3449_v36, %v3445_v16 }
0x1334   : > { %v1944_v38 = vsel %vm1926_vm14, %v1943_v37, 0.0 }
0x1335   : > { %v1945_v39 = vsel %vm1861_vm5, %v1944_v38, 0.0 }
0x1336   : > { %1946 = vadd.xlane.f32.xlu0 %v1945_v39 }
0x13c3   : > { %v1947_v55 = vpop.xlane.xlu0 %1946 }
0x13c4   : > { %v1949_v57 = vsel %vm1926_vm14, %v1947_v55, 0.0 }
0x13c5   : > { %v1950_v58 = vadd.f32 %v1949_v57, %v1948_v56 }
0x13c7   : > { %3126 = vmatmul.mubr.msk.f32.vlgmr.msra.gmra.mrb[14].mxu1 %vm1861_vm5, %v1950_v58 }
0x13c8   : > { %3128 = vmatpush1.msk.msra.mxu1 %vm2348_vm13, %v2340_v40  ;;  %2492 = vmatprep.mubr.f32.mxu1 %v3491_v27  ;;  %v3382_v27 = vld [vmem:[%s3662_s4 + $0x18] sm:$0xff]  }
0x13c9   : > { %3203 = vmatprep.subr.bf16.mxu1 %v3370_v59 }
0x13cb   : > { %3129 = vmatmul.mubr.msk.f32.vlgmr.msra.gmra.mrb[32].mxu1 %vm1861_vm5, %v1950_v58 }
0x13cc   : > { %3204 = vmatpush3.bf16.msra.mxu1 %v3371_v60 }
0x13cd   : > { %3205 = vmatprep.subr.bf16.mxu1 %v3372_v51 }
0x13d0   : > { %3206 = vmatpush3.bf16.msra.mxu1 %v3374_v1 }
0x13d1   : > { %3207 = vmatprep.subr.bf16.mxu1 %v3376_v61 }
0x13d4   : > { %3208 = vmatpush3.bf16.msra.mxu1 %v3378_v62 }
0x13d5   : > { %3209 = vmatprep.subr.bf16.mxu1 %v3380_v63 }
0x13d8   : > { %3210 = vmatpush3.bf16.msra.mxu1 %v3382_v27 }
0x13d9   : > { %3211 = vmatprep.subr.bf16.mxu1 %v3384_v0 }
0x13dc   : > { %3212 = vmatpush3.bf16.msra.mxu1 %v3386_v2 }
0x13dd   : > { %3213 = vmatprep.subr.bf16.mxu1 %v3388_v3 }
0x13e0   : > { %3214 = vmatpush3.bf16.msra.mxu1 %v3390_v4 }
0x13e1   : > { %3215 = vmatprep.subr.bf16.mxu1 %v3392_v5 }
0x13e4   : > { %3216 = vmatpush3.bf16.msra.mxu1 %v3394_v6 }
0x13e5   : > { %3217 = vmatprep.subr.bf16.mxu1 %v3396_v49 }
0x13e8   : > { %3218 = vmatpush3.bf16.msra.mxu1 %v3398_v9 }
0x149a   : > { %v2423_v48 = vpop.f32.mrb[14].mxu1 }
0x149b   : > { %v2499_v15 = vmul.f32 %v2423_v48, %v3874_v14  ;;  %v2425_v16 = vpop.f32.mrb[15].mxu1 }
0x149c   : > { %v2500_v18 = vmul.f32 %v2425_v16, %v3876_v17 }
0x149d   : > { %v2503_v22 = vpack.c.bf16 %v2499_v15, %v2499_v15 }
0x149e   : > { %v2504_v19 = vpack.c.bf16 %v2500_v18, %v2500_v18  ;;  %v2494_v20 = vpop.f32.mrb[32].mxu1 }
0x149f   : > { %v2501_v23 = vmul.f32 %v2494_v20, %v3878_v30  ;;  %v2496_v24 = vpop.f32.mrb[33].mxu1 }
0x14a0   : > { %v2502_v25 = vmul.f32 %v2496_v24, %v3880_v31  ;;  %2795 = vmatprep.mubr.bf16.mxu1 %v2504_v19 }
0x14a1   : > { %2796 = vmatmul.mubr.bf16.vlgmr.msra.gmra.mrb[36].mxu1 %v2503_v22  ;;  %v2505_v29 = vpack.c.bf16 %v2501_v23, %v2501_v23 }
0x14a2   : > { %v2506_v26 = vpack.c.bf16 %v2502_v25, %v2502_v25 }
0x14a4   : > { %2835 = vmatprep.mubr.bf16.mxu0 %v2506_v26 }
0x14a5   : > { %2836 = vmatmul.mubr.bf16.vlgmr.msra.gmra.mrb[28].mxu0 %v2505_v29 }
0x1574   : > { %v3219_v32 = vpop.f32.mrb[36].mxu1 }
0x1575   : > { %v3220_v33 = vpop.f32.mrb[37].mxu1 }
0x1576   : > { %v3221_v14 = vadd.f32 %v3220_v33, %v3219_v32  ;;  %v3222_v34 = vpop.f32.mrb[38].mxu1 }
0x1577   : > { %v3223_v35 = vpop.f32.mrb[39].mxu1 }
0x1578   : > { %v3241_v17 = vpop.f32.mrb[28].mxu0  ;;  %v2798_v37 = vadd.f32 %v3221_v14, %v3799_v21  ;;  %2847 = sbr.rel (%p3162_p5) target bundleno = 5816 (0x16b8), region = 100 }
0x1579   : > { %v3242_v36 = vpop.f32.mrb[29].mxu0 }
0x157a   : > { %v3243_v38 = vadd.f32 %v3242_v36, %v3241_v17  ;;  %v3244_v30 = vpop.f32.mrb[30].mxu0 }
0x157b   : > { %v3245_v39 = vpop.f32.mrb[31].mxu0 }
0x157c   : > { %v2838_v40 = vadd.f32 %v3243_v38, %v2798_v37 }
0x157e   : > { %2843 = vst.msk [vmem:[#allocation2] sm:$0xff] %vm741_vm1, %v2838_v40  ;;  %v2850_v31 = vsel (!%p3162_p5), %vm741_vm1, %v2838_v40, 0.0 }
0x157f   : > { %2851 = vadd.xlane.f32.xlu0 %v2850_v31 }
0x160c   : > { %v2852_v41 = vpop.xlane.xlu0 %2851 }
0x160d   : > { %v2853_v28 = vmul.f32 0.015625, %v2852_v41 }
0x160f   : > { %v2854_v42 = vsub.f32 %v2838_v40, %v2853_v28 }
0x1611   : > { %v2855_v43 = vmul.f32 %v2854_v42, %v2854_v42 }
0x1613   : > { %v2856_v44 = vsel %vm741_vm1, %v2855_v43, 0.0 }
0x1614   : > { %2857 = vadd.xlane.f32.xlu0 %v2856_v44 }
0x16a1   : > { %v2858_v21 = vpop.xlane.xlu0 %2857 }
0x16a2   : > { %v2859_v46 = vmul.f32 0.015625, %v2858_v21 }
0x16a4   : > { %v2860_v47 = vadd.f32 1e-05, %v2859_v46 }
0x16a6   : > { %3450 = vrsqrt.f32 %v2860_v47 }
0x16b0   : > { %v3451_v12 = vpop.eup %3450 }
0x16b1   : > { %v2862_v45 = vmul.f32 %v3451_v12, %v2854_v42 }
0x16b3   : > { %v2869_v53 = vmul.f32 %v3163_v50, %v2862_v45 }
0x16b5   : > { %v2876_v54 = vadd.f32 %v3164_v52, %v2869_v53 }
0x16b7   : > { %2877 = vst.msk [vmem:[#allocation2] sm:$0xff] %vm741_vm1, %v2876_v54 }
0x16b8 PF: > { %p3327_p6 = scmp.eq.s32.totalorder %s3602_s28, 1  ;;  %s3500_s25 = smov [#allocation2]  }
0x16b9   : > { %s2885_s18 = sshll.u32 %s3500_s25, 4  ;;  %s2886_s18 = int_to_ptr.vmem [resolvable:$true] %s2885_s18 }
0x16ba   : > { %s3452_s20 = scalar_lea.vmem %s2886_s18, 128  ;;  %p3459_p10 = scmp.lt.s32.totalorder %s2886_s18, %s2886_s18 }
0x16bb   : > { %p3453_p7 = scmp.ne.s32.totalorder %s2886_s18, %s3452_s20  ;;  %p3460_p11 = scmp.lt.s32.totalorder %s3452_s20, %s3452_s20 }
0x16bd   : > { %p3454_p8 = pnand %p3453_p7, %p3327_p6  ;;  %p3461_p12 = por %p3460_p11, %p3459_p10 }
0x16bf   : > { %p3455_p9 = pneg %p3454_p8 }
0x16c1   : > { %p3462_p13 = pnand %p3461_p12, %p3455_p9 }
0x16c3   : > { %3465 = shalt.err (!%p3462_p13)
}
0x16c4   : > { %s4050_s7 = sld [smem:[#allocation14_spill]] }
0x16ca   : > { %s3466_s23 = scalar_lea.hbm %s4050_s7, 128 }
0x16cb   : > { %p3467_p0 = scmp.ne.s32.totalorder %s4050_s7, %s3466_s23  ;;  %p3472_p3 = scmp.lt.u32.totalorder %s3466_s23, %s4050_s7 }
0x16cd   : > { %p3468_p1 = pnand %p3467_p0, %p3327_p6 }
0x16cf   : > { %p3469_p2 = pneg %p3468_p1 }
0x16d1   : > { %p3474_p4 = pnand %p3472_p3, %p3469_p2 }
0x16d3   : > { %3477 = shalt.err (!%p3474_p4)
}
0x16d4   : > { %3324 = dma.vmem_to_hbm [thread:$0]  (%p3327_p6), %s2886_s18, 128, %s4050_s7, [#allocation3]  }
0x16d5   : > { %3483 = dma.done.wait (%p3327_p6), [#allocation3], 128  }
0x16d6   : > { %3485 = vsyncadd (%p3327_p6), [#allocation3], 4294967168 }
0x16d7 PF: > { %s4051_s4 = sld [smem:[#allocation5_spill]] }
0x16dd   : > { %s29_s27 = sadd.s32 1, %s4051_s4  }
0x16de   : > { %p26_p5 = scmp.ge.s32.totalorder %s29_s27, 4  }
0x16e0   :  { %28 = sbr.rel (!%p26_p5) target bundleno = 11 (0xb), region = 157 }
0x16e7   :  { %2898 = vsyncpa [#allocation3], 1 }
0x16e8   :  { %2900 = vsyncpa [#allocation3 + $0x1], 1 }

</bundles_post_ra>
